<compile_context>
chip_gen: v7x
topology: tpu7x:2x2x1
jax: 0.10.0
libtpu: 0.0.40
codegen_flags: <defaults>
</compile_context>

<pallas_src>
import jax
import jax.numpy as jnp
from jax import lax
from jax.experimental import pallas as pl
from jax.experimental.pallas import tpu as pltpu

KERNEL_SIZE = 41
PAD = (KERNEL_SIZE - 1) // 2     # 20
HALO = 128                       # lane-aligned zero halo for conv1 scratch (>= PAD)
CPAD = 24                        # sublane zero halo for conv2 scratch (>= PAD, mult of 8)


def _tree_sum(terms):
    """Balanced pairwise sum to shorten the VPU dependency chain."""
    while len(terms) > 1:
        nxt = [terms[i] + terms[i + 1] for i in range(0, len(terms) - 1, 2)]
        if len(terms) % 2:
            nxt.append(terms[-1])
        terms = nxt
    return terms[0]


def _gca_kernel(x_ref, w1t_ref, w2_ref, out_ref, upad_ref, ppad_ref):
    # x_ref:    (1, C, T)  one batch element, UNPADDED
    # w1t_ref:  (K, C)     conv1 weight transposed (VMEM)
    # w2_ref:   (K,)       conv2 taps (SMEM scalars)
    # out_ref:  (1, C, T)
    # upad_ref: VMEM (K, T + 2*HALO) scratch — conv1 skew-sum workspace
    # ppad_ref: VMEM (C + 2*CPAD, 1) scratch — conv2 channel-conv workspace
    x = x_ref[0]                                            # (C, T)
    C, T = x.shape

    # ---- conv1: single MXU matmul U = W1^T @ x -> (K, T) ------------------
    u = jnp.dot(w1t_ref[...], x, preferred_element_type=jnp.float32)

    # Zero-pad U along time inside VMEM (padding commutes with the channel
    # contraction).  Center is stored at a lane-aligned offset (HALO = 128) so
    # the (K, T) store is unmasked where possible.  Halos are re-zeroed every
    # step so this stays correct under megacore grid sharding.
    upad_ref[:, :HALO] = jnp.zeros((KERNEL_SIZE, HALO), jnp.float32)
    upad_ref[:, HALO + T:] = jnp.zeros((KERNEL_SIZE, HALO), jnp.float32)
    upad_ref[:, HALO:HALO + T] = u

    # Skewed diagonal sum on the tiny (K, Tp) scratch:
    #   ctx[t] = sum_k Upad[k, t + k - PAD]
    base = HALO - PAD
    ctx = _tree_sum([upad_ref[k:k + 1, base + k:base + k + T]
                     for k in range(KERNEL_SIZE)])           # (1, T)
    sig_ctx = jax.nn.sigmoid(ctx)                            # (1, T)

    # ---- pooled[c] = sum_t x[c, t] * sigmoid(ctx)[t]  -> (C, 1) ------------
    pooled = jnp.sum(x * sig_ctx, axis=1, keepdims=True).astype(jnp.float32)

    # ---- conv2: direct 41-tap conv along the channel (sublane) axis --------
    ppad_ref[:CPAD, :] = jnp.zeros((CPAD, 1), jnp.float32)
    ppad_ref[CPAD + C:, :] = jnp.zeros((CPAD, 1), jnp.float32)
    ppad_ref[CPAD:CPAD + C, :] = pooled

    cbase = CPAD - PAD
    trans = _tree_sum([w2_ref[k] * ppad_ref[cbase + k:cbase + k + C, :]
                       for k in range(KERNEL_SIZE)])         # (C, 1)
    gate = jax.nn.sigmoid(trans)                             # (C, 1)

    # ---- gate broadcast over T; one lane-dense store -----------------------
    out_ref[0] = (gate * x).astype(out_ref.dtype)


def contextnet_gca(x, w1, w2):
    """x: (B, C, T) f32; w1: (1, C, 41); w2: (1, 1, 41). Returns (B, C, T)."""
    B, C, T = x.shape
    K = KERNEL_SIZE

    # Parameter layout glue (tiny, no hot-path compute / no activation pad):
    w1t = jnp.transpose(w1[0], (1, 0)).astype(jnp.float32)   # (K, C)
    w2taps = w2[0, 0].astype(jnp.float32)                    # (K,) -> SMEM scalars

    return pl.pallas_call(
        _gca_kernel,
        out_shape=jax.ShapeDtypeStruct((B, C, T), x.dtype),
        grid=(B,),
        in_specs=[
            pl.BlockSpec((1, C, T), lambda b: (b, 0, 0)),
            pl.BlockSpec((K, C), lambda b: (0, 0)),
            pl.BlockSpec(memory_space=pltpu.MemorySpace.SMEM),
        ],
        out_specs=pl.BlockSpec((1, C, T), lambda b: (b, 0, 0)),
        scratch_shapes=[
            pltpu.VMEM((K, T + 2 * HALO), jnp.float32),
            pltpu.VMEM((C + 2 * CPAD, 1), jnp.float32),
        ],
        compiler_params=pltpu.CompilerParams(
            dimension_semantics=("parallel",),
            vmem_limit_bytes=64 * 1024 * 1024,
        ),
    )(x, w1t, w2taps)


def reference(x, w1, w2):
    """Pure-JAX reference mirroring the PyTorch forward exactly."""
    dn = ("NCH", "OIH", "NCH")
    ctx = lax.conv_general_dilated(x, w1, (1,), [(PAD, PAD)],
                                   dimension_numbers=dn)           # (B,1,T)
    ctx = jax.nn.sigmoid(ctx)
    pooled = jnp.einsum("bct,bst->bcs", x, ctx)                    # (B,C,1)
    pooled_t = jnp.transpose(pooled, (0, 2, 1))                    # (B,1,C)
    trans = lax.conv_general_dilated(pooled_t, w2, (1,), [(PAD, PAD)],
                                     dimension_numbers=dn)         # (B,1,C)
    trans = jnp.transpose(trans, (0, 2, 1))                        # (B,C,1)
    gate = jax.nn.sigmoid(trans)
    return gate * x                                                # (B,C,T)


if __name__ == "__main__":
    B, C, T = 2, 16, 32  # batch, dim, seq_length
    key = jax.random.PRNGKey(0)
    k_x, k_w1, k_w2 = jax.random.split(key, 3)

    x = jax.random.normal(k_x, (B, C, T), jnp.float32)
    input_lengths = jnp.full((B,), T, jnp.int32)  # unused by forward (matches PyTorch)

    # Deterministic weight init (PyTorch Conv1d default: U(-1/sqrt(fan_in), ...))
    bound1 = 1.0 / (C * KERNEL_SIZE) ** 0.5
    w1 = jax.random.uniform(k_w1, (1, C, KERNEL_SIZE), jnp.float32, -bound1, bound1)
    bound2 = 1.0 / (1 * KERNEL_SIZE) ** 0.5
    w2 = jax.random.uniform(k_w2, (1, 1, KERNEL_SIZE), jnp.float32, -bound2, bound2)

    out = contextnet_gca(x, w1, w2)
    out = jax.block_until_ready(out)

    ref = reference(x, w1, w2)
    assert out.shape == (B, C, T) and out.dtype == jnp.float32
    err = float(jnp.max(jnp.abs(out - ref)))
    assert jnp.allclose(out, ref, atol=1e-4, rtol=1e-4), err
    print("KERNEL_OK")
</pallas_src>

<mosaic_0001>
module attributes {stable_mosaic.version = 11 : i64} {
  func.func @_gca_kernel(%arg0: i32, %arg1: memref<1x16x32xf32, #tpu.memory_space<vmem>>, %arg2: memref<41x16xf32, #tpu.memory_space<vmem>>, %arg3: memref<41xf32, #tpu.memory_space<smem>>, %arg4: memref<1x16x32xf32, #tpu.memory_space<vmem>>, %arg5: memref<41x288xf32, #tpu.memory_space<vmem>>, %arg6: memref<64x1xf32, #tpu.memory_space<vmem>>) attributes {dimension_semantics = [#tpu.dimension_semantics<parallel>], iteration_bounds = array<i64: 2>, scalar_prefetch = 0 : i64, scratch_operands = 2 : i64, tpu.core_type = #tpu.core_type<tc>, window_params = [{transform_indices = @transform_0, window_bounds = array<i64: 1, 16, 32>}, {pipeline_mode = #tpu.pipeline_mode<synchronous>, transform_indices = @transform_1, window_bounds = array<i64: 41, 16>}, {transform_indices = @transform_2, window_bounds = array<i64: 41>}, {transform_indices = @transform_3, window_bounds = array<i64: 1, 16, 32>}]} {
    %c0 = arith.constant 0 : index
    %c0_0 = arith.constant 0 : index
    %c0_1 = arith.constant 0 : index
    %0 = vector.load %arg1[%c0, %c0_0, %c0_1] : memref<1x16x32xf32, #tpu.memory_space<vmem>>, vector<1x16x32xf32>
    %1 = vector.shape_cast %0 : vector<1x16x32xf32> to vector<16x32xf32>
    %c0_2 = arith.constant 0 : index
    %c0_3 = arith.constant 0 : index
    %2 = vector.load %arg2[%c0_2, %c0_3] : memref<41x16xf32, #tpu.memory_space<vmem>>, vector<41x16xf32>
    %cst = arith.constant dense<0.000000e+00> : vector<41x32xf32>
    %3 = tpu.matmul %2, %1, %cst {dimension_numbers = #tpu.dot_dimension_numbers<[1], [0], [0], [1], [0, 0, 1, 1], [], []>} : vector<41x16xf32>, vector<16x32xf32>, vector<41x32xf32> -> vector<41x32xf32>
    %cst_4 = arith.constant 0.000000e+00 : f32
    %4 = vector.broadcast %cst_4 : f32 to vector<41x128xf32>
    %c0_5 = arith.constant 0 : index
    %c0_6 = arith.constant 0 : index
    %5 = vector.load %arg5[%c0_5, %c0_6] : memref<41x288xf32, #tpu.memory_space<vmem>>, vector<41x128xf32>
    tpu.vector_store %arg5[%c0_5, %c0_6], %4 {strides = array<i32>} : memref<41x288xf32, #tpu.memory_space<vmem>>, vector<41x128xf32>,
    %cst_7 = arith.constant 0.000000e+00 : f32
    %6 = vector.broadcast %cst_7 : f32 to vector<41x128xf32>
    %c0_8 = arith.constant 0 : index
    %c160 = arith.constant 160 : index
    %7 = vector.load %arg5[%c0_8, %c160] : memref<41x288xf32, #tpu.memory_space<vmem>>, vector<41x128xf32>
    tpu.vector_store %arg5[%c0_8, %c160], %6 {strides = array<i32>} : memref<41x288xf32, #tpu.memory_space<vmem>>, vector<41x128xf32>,
    %c0_9 = arith.constant 0 : index
    %c128 = arith.constant 128 : index
    %8 = vector.load %arg5[%c0_9, %c128] : memref<41x288xf32, #tpu.memory_space<vmem>>, vector<41x32xf32>
    tpu.vector_store %arg5[%c0_9, %c128], %3 {strides = array<i32>} : memref<41x288xf32, #tpu.memory_space<vmem>>, vector<41x32xf32>,
    %c0_10 = arith.constant 0 : index
    %c108 = arith.constant 108 : index
    %9 = vector.load %arg5[%c0_10, %c108] : memref<41x288xf32, #tpu.memory_space<vmem>>, vector<1x32xf32>
    %c1 = arith.constant 1 : index
    %c109 = arith.constant 109 : index
    %10 = vector.load %arg5[%c1, %c109] : memref<41x288xf32, #tpu.memory_space<vmem>>, vector<1x32xf32>
    %c2 = arith.constant 2 : index
    %c110 = arith.constant 110 : index
    %11 = vector.load %arg5[%c2, %c110] : memref<41x288xf32, #tpu.memory_space<vmem>>, vector<1x32xf32>
    %c3 = arith.constant 3 : index
    %c111 = arith.constant 111 : index
    %12 = vector.load %arg5[%c3, %c111] : memref<41x288xf32, #tpu.memory_space<vmem>>, vector<1x32xf32>
    %c4 = arith.constant 4 : index
    %c112 = arith.constant 112 : index
    %13 = vector.load %arg5[%c4, %c112] : memref<41x288xf32, #tpu.memory_space<vmem>>, vector<1x32xf32>
    %c5 = arith.constant 5 : index
    %c113 = arith.constant 113 : index
    %14 = vector.load %arg5[%c5, %c113] : memref<41x288xf32, #tpu.memory_space<vmem>>, vector<1x32xf32>
    %c6 = arith.constant 6 : index
    %c114 = arith.constant 114 : index
    %15 = vector.load %arg5[%c6, %c114] : memref<41x288xf32, #tpu.memory_space<vmem>>, vector<1x32xf32>
    %c7 = arith.constant 7 : index
    %c115 = arith.constant 115 : index
    %16 = vector.load %arg5[%c7, %c115] : memref<41x288xf32, #tpu.memory_space<vmem>>, vector<1x32xf32>
    %c8 = arith.constant 8 : index
    %c116 = arith.constant 116 : index
    %17 = vector.load %arg5[%c8, %c116] : memref<41x288xf32, #tpu.memory_space<vmem>>, vector<1x32xf32>
    %c9 = arith.constant 9 : index
    %c117 = arith.constant 117 : index
    %18 = vector.load %arg5[%c9, %c117] : memref<41x288xf32, #tpu.memory_space<vmem>>, vector<1x32xf32>
    %c10 = arith.constant 10 : index
    %c118 = arith.constant 118 : index
    %19 = vector.load %arg5[%c10, %c118] : memref<41x288xf32, #tpu.memory_space<vmem>>, vector<1x32xf32>
    %c11 = arith.constant 11 : index
    %c119 = arith.constant 119 : index
    %20 = vector.load %arg5[%c11, %c119] : memref<41x288xf32, #tpu.memory_space<vmem>>, vector<1x32xf32>
    %c12 = arith.constant 12 : index
    %c120 = arith.constant 120 : index
    %21 = vector.load %arg5[%c12, %c120] : memref<41x288xf32, #tpu.memory_space<vmem>>, vector<1x32xf32>
    %c13 = arith.constant 13 : index
    %c121 = arith.constant 121 : index
    %22 = vector.load %arg5[%c13, %c121] : memref<41x288xf32, #tpu.memory_space<vmem>>, vector<1x32xf32>
    %c14 = arith.constant 14 : index
    %c122 = arith.constant 122 : index
    %23 = vector.load %arg5[%c14, %c122] : memref<41x288xf32, #tpu.memory_space<vmem>>, vector<1x32xf32>
    %c15 = arith.constant 15 : index
    %c123 = arith.constant 123 : index
    %24 = vector.load %arg5[%c15, %c123] : memref<41x288xf32, #tpu.memory_space<vmem>>, vector<1x32xf32>
    %c16 = arith.constant 16 : index
    %c124 = arith.constant 124 : index
    %25 = vector.load %arg5[%c16, %c124] : memref<41x288xf32, #tpu.memory_space<vmem>>, vector<1x32xf32>
    %c17 = arith.constant 17 : index
    %c125 = arith.constant 125 : index
    %26 = vector.load %arg5[%c17, %c125] : memref<41x288xf32, #tpu.memory_space<vmem>>, vector<1x32xf32>
    %c18 = arith.constant 18 : index
    %c126 = arith.constant 126 : index
    %27 = vector.load %arg5[%c18, %c126] : memref<41x288xf32, #tpu.memory_space<vmem>>, vector<1x32xf32>
    %c19 = arith.constant 19 : index
    %c127 = arith.constant 127 : index
    %28 = vector.load %arg5[%c19, %c127] : memref<41x288xf32, #tpu.memory_space<vmem>>, vector<1x32xf32>
    %c20 = arith.constant 20 : index
    %c128_11 = arith.constant 128 : index
    %29 = vector.load %arg5[%c20, %c128_11] : memref<41x288xf32, #tpu.memory_space<vmem>>, vector<1x32xf32>
    %c21 = arith.constant 21 : index
    %c129 = arith.constant 129 : index
    %30 = vector.load %arg5[%c21, %c129] : memref<41x288xf32, #tpu.memory_space<vmem>>, vector<1x32xf32>
    %c22 = arith.constant 22 : index
    %c130 = arith.constant 130 : index
    %31 = vector.load %arg5[%c22, %c130] : memref<41x288xf32, #tpu.memory_space<vmem>>, vector<1x32xf32>
    %c23 = arith.constant 23 : index
    %c131 = arith.constant 131 : index
    %32 = vector.load %arg5[%c23, %c131] : memref<41x288xf32, #tpu.memory_space<vmem>>, vector<1x32xf32>
    %c24 = arith.constant 24 : index
    %c132 = arith.constant 132 : index
    %33 = vector.load %arg5[%c24, %c132] : memref<41x288xf32, #tpu.memory_space<vmem>>, vector<1x32xf32>
    %c25 = arith.constant 25 : index
    %c133 = arith.constant 133 : index
    %34 = vector.load %arg5[%c25, %c133] : memref<41x288xf32, #tpu.memory_space<vmem>>, vector<1x32xf32>
    %c26 = arith.constant 26 : index
    %c134 = arith.constant 134 : index
    %35 = vector.load %arg5[%c26, %c134] : memref<41x288xf32, #tpu.memory_space<vmem>>, vector<1x32xf32>
    %c27 = arith.constant 27 : index
    %c135 = arith.constant 135 : index
    %36 = vector.load %arg5[%c27, %c135] : memref<41x288xf32, #tpu.memory_space<vmem>>, vector<1x32xf32>
    %c28 = arith.constant 28 : index
    %c136 = arith.constant 136 : index
    %37 = vector.load %arg5[%c28, %c136] : memref<41x288xf32, #tpu.memory_space<vmem>>, vector<1x32xf32>
    %c29 = arith.constant 29 : index
    %c137 = arith.constant 137 : index
    %38 = vector.load %arg5[%c29, %c137] : memref<41x288xf32, #tpu.memory_space<vmem>>, vector<1x32xf32>
    %c30 = arith.constant 30 : index
    %c138 = arith.constant 138 : index
    %39 = vector.load %arg5[%c30, %c138] : memref<41x288xf32, #tpu.memory_space<vmem>>, vector<1x32xf32>
    %c31 = arith.constant 31 : index
    %c139 = arith.constant 139 : index
    %40 = vector.load %arg5[%c31, %c139] : memref<41x288xf32, #tpu.memory_space<vmem>>, vector<1x32xf32>
    %c32 = arith.constant 32 : index
    %c140 = arith.constant 140 : index
    %41 = vector.load %arg5[%c32, %c140] : memref<41x288xf32, #tpu.memory_space<vmem>>, vector<1x32xf32>
    %c33 = arith.constant 33 : index
    %c141 = arith.constant 141 : index
    %42 = vector.load %arg5[%c33, %c141] : memref<41x288xf32, #tpu.memory_space<vmem>>, vector<1x32xf32>
    %c34 = arith.constant 34 : index
    %c142 = arith.constant 142 : index
    %43 = vector.load %arg5[%c34, %c142] : memref<41x288xf32, #tpu.memory_space<vmem>>, vector<1x32xf32>
    %c35 = arith.constant 35 : index
    %c143 = arith.constant 143 : index
    %44 = vector.load %arg5[%c35, %c143] : memref<41x288xf32, #tpu.memory_space<vmem>>, vector<1x32xf32>
    %c36 = arith.constant 36 : index
    %c144 = arith.constant 144 : index
    %45 = vector.load %arg5[%c36, %c144] : memref<41x288xf32, #tpu.memory_space<vmem>>, vector<1x32xf32>
    %c37 = arith.constant 37 : index
    %c145 = arith.constant 145 : index
    %46 = vector.load %arg5[%c37, %c145] : memref<41x288xf32, #tpu.memory_space<vmem>>, vector<1x32xf32>
    %c38 = arith.constant 38 : index
    %c146 = arith.constant 146 : index
    %47 = vector.load %arg5[%c38, %c146] : memref<41x288xf32, #tpu.memory_space<vmem>>, vector<1x32xf32>
    %c39 = arith.constant 39 : index
    %c147 = arith.constant 147 : index
    %48 = vector.load %arg5[%c39, %c147] : memref<41x288xf32, #tpu.memory_space<vmem>>, vector<1x32xf32>
    %c40 = arith.constant 40 : index
    %c148 = arith.constant 148 : index
    %49 = vector.load %arg5[%c40, %c148] : memref<41x288xf32, #tpu.memory_space<vmem>>, vector<1x32xf32>
    %50 = arith.addf %9, %10 : vector<1x32xf32>
    %51 = arith.addf %11, %12 : vector<1x32xf32>
    %52 = arith.addf %13, %14 : vector<1x32xf32>
    %53 = arith.addf %15, %16 : vector<1x32xf32>
    %54 = arith.addf %17, %18 : vector<1x32xf32>
    %55 = arith.addf %19, %20 : vector<1x32xf32>
    %56 = arith.addf %21, %22 : vector<1x32xf32>
    %57 = arith.addf %23, %24 : vector<1x32xf32>
    %58 = arith.addf %25, %26 : vector<1x32xf32>
    %59 = arith.addf %27, %28 : vector<1x32xf32>
    %60 = arith.addf %29, %30 : vector<1x32xf32>
    %61 = arith.addf %31, %32 : vector<1x32xf32>
    %62 = arith.addf %33, %34 : vector<1x32xf32>
    %63 = arith.addf %35, %36 : vector<1x32xf32>
    %64 = arith.addf %37, %38 : vector<1x32xf32>
    %65 = arith.addf %39, %40 : vector<1x32xf32>
    %66 = arith.addf %41, %42 : vector<1x32xf32>
    %67 = arith.addf %43, %44 : vector<1x32xf32>
    %68 = arith.addf %45, %46 : vector<1x32xf32>
    %69 = arith.addf %47, %48 : vector<1x32xf32>
    %70 = arith.addf %50, %51 : vector<1x32xf32>
    %71 = arith.addf %52, %53 : vector<1x32xf32>
    %72 = arith.addf %54, %55 : vector<1x32xf32>
    %73 = arith.addf %56, %57 : vector<1x32xf32>
    %74 = arith.addf %58, %59 : vector<1x32xf32>
    %75 = arith.addf %60, %61 : vector<1x32xf32>
    %76 = arith.addf %62, %63 : vector<1x32xf32>
    %77 = arith.addf %64, %65 : vector<1x32xf32>
    %78 = arith.addf %66, %67 : vector<1x32xf32>
    %79 = arith.addf %68, %69 : vector<1x32xf32>
    %80 = arith.addf %70, %71 : vector<1x32xf32>
    %81 = arith.addf %72, %73 : vector<1x32xf32>
    %82 = arith.addf %74, %75 : vector<1x32xf32>
    %83 = arith.addf %76, %77 : vector<1x32xf32>
    %84 = arith.addf %78, %79 : vector<1x32xf32>
    %85 = arith.addf %80, %81 : vector<1x32xf32>
    %86 = arith.addf %82, %83 : vector<1x32xf32>
    %87 = arith.addf %84, %49 : vector<1x32xf32>
    %88 = arith.addf %85, %86 : vector<1x32xf32>
    %89 = arith.addf %88, %87 : vector<1x32xf32>
    %90 = arith.negf %89 : vector<1x32xf32>
    %91 = math.exp %90 : vector<1x32xf32>
    %cst_12 = arith.constant 1.000000e+00 : f32
    %92 = vector.broadcast %cst_12 : f32 to vector<1x32xf32>
    %93 = arith.addf %92, %91 : vector<1x32xf32>
    %94 = arith.divf %92, %93 : vector<1x32xf32>
    %95 = vector.broadcast %94 : vector<1x32xf32> to vector<16x32xf32>
    %96 = arith.mulf %1, %95 : vector<16x32xf32>
    %cst_13 = arith.constant dense<0.000000e+00> : vector<16xf32>
    %97 = vector.multi_reduction <add>, %96, %cst_13 [1] : vector<16x32xf32> to vector<16xf32>
    %98 = vector.shape_cast %97 : vector<16xf32> to vector<16x1xf32>
    %cst_14 = arith.constant 0.000000e+00 : f32
    %99 = vector.broadcast %cst_14 : f32 to vector<24x1xf32>
    %c0_15 = arith.constant 0 : index
    %c0_16 = arith.constant 0 : index
    %100 = vector.load %arg6[%c0_15, %c0_16] : memref<64x1xf32, #tpu.memory_space<vmem>>, vector<24x1xf32>
    tpu.vector_store %arg6[%c0_15, %c0_16], %99 {strides = array<i32>} : memref<64x1xf32, #tpu.memory_space<vmem>>, vector<24x1xf32>,
    %cst_17 = arith.constant 0.000000e+00 : f32
    %101 = vector.broadcast %cst_17 : f32 to vector<24x1xf32>
    %c40_18 = arith.constant 40 : index
    %c0_19 = arith.constant 0 : index
    %102 = vector.load %arg6[%c40_18, %c0_19] : memref<64x1xf32, #tpu.memory_space<vmem>>, vector<24x1xf32>
    tpu.vector_store %arg6[%c40_18, %c0_19], %101 {strides = array<i32>} : memref<64x1xf32, #tpu.memory_space<vmem>>, vector<24x1xf32>,
    %c24_20 = arith.constant 24 : index
    %c0_21 = arith.constant 0 : index
    %103 = vector.load %arg6[%c24_20, %c0_21] : memref<64x1xf32, #tpu.memory_space<vmem>>, vector<16x1xf32>
    tpu.vector_store %arg6[%c24_20, %c0_21], %98 {strides = array<i32>} : memref<64x1xf32, #tpu.memory_space<vmem>>, vector<16x1xf32>,
    %c0_22 = arith.constant 0 : index
    %104 = memref.load %arg3[%c0_22] : memref<41xf32, #tpu.memory_space<smem>>
    %c4_23 = arith.constant 4 : index
    %c0_24 = arith.constant 0 : index
    %105 = vector.load %arg6[%c4_23, %c0_24] : memref<64x1xf32, #tpu.memory_space<vmem>>, vector<16x1xf32>
    %106 = vector.broadcast %104 : f32 to vector<16x1xf32>
    %107 = arith.mulf %106, %105 : vector<16x1xf32>
    %c1_25 = arith.constant 1 : index
    %108 = memref.load %arg3[%c1_25] : memref<41xf32, #tpu.memory_space<smem>>
    %c5_26 = arith.constant 5 : index
    %c0_27 = arith.constant 0 : index
    %109 = vector.load %arg6[%c5_26, %c0_27] : memref<64x1xf32, #tpu.memory_space<vmem>>, vector<16x1xf32>
    %110 = vector.broadcast %108 : f32 to vector<16x1xf32>
    %111 = arith.mulf %110, %109 : vector<16x1xf32>
    %c2_28 = arith.constant 2 : index
    %112 = memref.load %arg3[%c2_28] : memref<41xf32, #tpu.memory_space<smem>>
    %c6_29 = arith.constant 6 : index
    %c0_30 = arith.constant 0 : index
    %113 = vector.load %arg6[%c6_29, %c0_30] : memref<64x1xf32, #tpu.memory_space<vmem>>, vector<16x1xf32>
    %114 = vector.broadcast %112 : f32 to vector<16x1xf32>
    %115 = arith.mulf %114, %113 : vector<16x1xf32>
    %c3_31 = arith.constant 3 : index
    %116 = memref.load %arg3[%c3_31] : memref<41xf32, #tpu.memory_space<smem>>
    %c7_32 = arith.constant 7 : index
    %c0_33 = arith.constant 0 : index
    %117 = vector.load %arg6[%c7_32, %c0_33] : memref<64x1xf32, #tpu.memory_space<vmem>>, vector<16x1xf32>
    %118 = vector.broadcast %116 : f32 to vector<16x1xf32>
    %119 = arith.mulf %118, %117 : vector<16x1xf32>
    %c4_34 = arith.constant 4 : index
    %120 = memref.load %arg3[%c4_34] : memref<41xf32, #tpu.memory_space<smem>>
    %c8_35 = arith.constant 8 : index
    %c0_36 = arith.constant 0 : index
    %121 = vector.load %arg6[%c8_35, %c0_36] : memref<64x1xf32, #tpu.memory_space<vmem>>, vector<16x1xf32>
    %122 = vector.broadcast %120 : f32 to vector<16x1xf32>
    %123 = arith.mulf %122, %121 : vector<16x1xf32>
    %c5_37 = arith.constant 5 : index
    %124 = memref.load %arg3[%c5_37] : memref<41xf32, #tpu.memory_space<smem>>
    %c9_38 = arith.constant 9 : index
    %c0_39 = arith.constant 0 : index
    %125 = vector.load %arg6[%c9_38, %c0_39] : memref<64x1xf32, #tpu.memory_space<vmem>>, vector<16x1xf32>
    %126 = vector.broadcast %124 : f32 to vector<16x1xf32>
    %127 = arith.mulf %126, %125 : vector<16x1xf32>
    %c6_40 = arith.constant 6 : index
    %128 = memref.load %arg3[%c6_40] : memref<41xf32, #tpu.memory_space<smem>>
    %c10_41 = arith.constant 10 : index
    %c0_42 = arith.constant 0 : index
    %129 = vector.load %arg6[%c10_41, %c0_42] : memref<64x1xf32, #tpu.memory_space<vmem>>, vector<16x1xf32>
    %130 = vector.broadcast %128 : f32 to vector<16x1xf32>
    %131 = arith.mulf %130, %129 : vector<16x1xf32>
    %c7_43 = arith.constant 7 : index
    %132 = memref.load %arg3[%c7_43] : memref<41xf32, #tpu.memory_space<smem>>
    %c11_44 = arith.constant 11 : index
    %c0_45 = arith.constant 0 : index
    %133 = vector.load %arg6[%c11_44, %c0_45] : memref<64x1xf32, #tpu.memory_space<vmem>>, vector<16x1xf32>
    %134 = vector.broadcast %132 : f32 to vector<16x1xf32>
    %135 = arith.mulf %134, %133 : vector<16x1xf32>
    %c8_46 = arith.constant 8 : index
    %136 = memref.load %arg3[%c8_46] : memref<41xf32, #tpu.memory_space<smem>>
    %c12_47 = arith.constant 12 : index
    %c0_48 = arith.constant 0 : index
    %137 = vector.load %arg6[%c12_47, %c0_48] : memref<64x1xf32, #tpu.memory_space<vmem>>, vector<16x1xf32>
    %138 = vector.broadcast %136 : f32 to vector<16x1xf32>
    %139 = arith.mulf %138, %137 : vector<16x1xf32>
    %c9_49 = arith.constant 9 : index
    %140 = memref.load %arg3[%c9_49] : memref<41xf32, #tpu.memory_space<smem>>
    %c13_50 = arith.constant 13 : index
    %c0_51 = arith.constant 0 : index
    %141 = vector.load %arg6[%c13_50, %c0_51] : memref<64x1xf32, #tpu.memory_space<vmem>>, vector<16x1xf32>
    %142 = vector.broadcast %140 : f32 to vector<16x1xf32>
    %143 = arith.mulf %142, %141 : vector<16x1xf32>
    %c10_52 = arith.constant 10 : index
    %144 = memref.load %arg3[%c10_52] : memref<41xf32, #tpu.memory_space<smem>>
    %c14_53 = arith.constant 14 : index
    %c0_54 = arith.constant 0 : index
    %145 = vector.load %arg6[%c14_53, %c0_54] : memref<64x1xf32, #tpu.memory_space<vmem>>, vector<16x1xf32>
    %146 = vector.broadcast %144 : f32 to vector<16x1xf32>
    %147 = arith.mulf %146, %145 : vector<16x1xf32>
    %c11_55 = arith.constant 11 : index
    %148 = memref.load %arg3[%c11_55] : memref<41xf32, #tpu.memory_space<smem>>
    %c15_56 = arith.constant 15 : index
    %c0_57 = arith.constant 0 : index
    %149 = vector.load %arg6[%c15_56, %c0_57] : memref<64x1xf32, #tpu.memory_space<vmem>>, vector<16x1xf32>
    %150 = vector.broadcast %148 : f32 to vector<16x1xf32>
    %151 = arith.mulf %150, %149 : vector<16x1xf32>
    %c12_58 = arith.constant 12 : index
    %152 = memref.load %arg3[%c12_58] : memref<41xf32, #tpu.memory_space<smem>>
    %c16_59 = arith.constant 16 : index
    %c0_60 = arith.constant 0 : index
    %153 = vector.load %arg6[%c16_59, %c0_60] : memref<64x1xf32, #tpu.memory_space<vmem>>, vector<16x1xf32>
    %154 = vector.broadcast %152 : f32 to vector<16x1xf32>
    %155 = arith.mulf %154, %153 : vector<16x1xf32>
    %c13_61 = arith.constant 13 : index
    %156 = memref.load %arg3[%c13_61] : memref<41xf32, #tpu.memory_space<smem>>
    %c17_62 = arith.constant 17 : index
    %c0_63 = arith.constant 0 : index
    %157 = vector.load %arg6[%c17_62, %c0_63] : memref<64x1xf32, #tpu.memory_space<vmem>>, vector<16x1xf32>
    %158 = vector.broadcast %156 : f32 to vector<16x1xf32>
    %159 = arith.mulf %158, %157 : vector<16x1xf32>
    %c14_64 = arith.constant 14 : index
    %160 = memref.load %arg3[%c14_64] : memref<41xf32, #tpu.memory_space<smem>>
    %c18_65 = arith.constant 18 : index
    %c0_66 = arith.constant 0 : index
    %161 = vector.load %arg6[%c18_65, %c0_66] : memref<64x1xf32, #tpu.memory_space<vmem>>, vector<16x1xf32>
    %162 = vector.broadcast %160 : f32 to vector<16x1xf32>
    %163 = arith.mulf %162, %161 : vector<16x1xf32>
    %c15_67 = arith.constant 15 : index
    %164 = memref.load %arg3[%c15_67] : memref<41xf32, #tpu.memory_space<smem>>
    %c19_68 = arith.constant 19 : index
    %c0_69 = arith.constant 0 : index
    %165 = vector.load %arg6[%c19_68, %c0_69] : memref<64x1xf32, #tpu.memory_space<vmem>>, vector<16x1xf32>
    %166 = vector.broadcast %164 : f32 to vector<16x1xf32>
    %167 = arith.mulf %166, %165 : vector<16x1xf32>
    %c16_70 = arith.constant 16 : index
    %168 = memref.load %arg3[%c16_70] : memref<41xf32, #tpu.memory_space<smem>>
    %c20_71 = arith.constant 20 : index
    %c0_72 = arith.constant 0 : index
    %169 = vector.load %arg6[%c20_71, %c0_72] : memref<64x1xf32, #tpu.memory_space<vmem>>, vector<16x1xf32>
    %170 = vector.broadcast %168 : f32 to vector<16x1xf32>
    %171 = arith.mulf %170, %169 : vector<16x1xf32>
    %c17_73 = arith.constant 17 : index
    %172 = memref.load %arg3[%c17_73] : memref<41xf32, #tpu.memory_space<smem>>
    %c21_74 = arith.constant 21 : index
    %c0_75 = arith.constant 0 : index
    %173 = vector.load %arg6[%c21_74, %c0_75] : memref<64x1xf32, #tpu.memory_space<vmem>>, vector<16x1xf32>
    %174 = vector.broadcast %172 : f32 to vector<16x1xf32>
    %175 = arith.mulf %174, %173 : vector<16x1xf32>
    %c18_76 = arith.constant 18 : index
    %176 = memref.load %arg3[%c18_76] : memref<41xf32, #tpu.memory_space<smem>>
    %c22_77 = arith.constant 22 : index
    %c0_78 = arith.constant 0 : index
    %177 = vector.load %arg6[%c22_77, %c0_78] : memref<64x1xf32, #tpu.memory_space<vmem>>, vector<16x1xf32>
    %178 = vector.broadcast %176 : f32 to vector<16x1xf32>
    %179 = arith.mulf %178, %177 : vector<16x1xf32>
    %c19_79 = arith.constant 19 : index
    %180 = memref.load %arg3[%c19_79] : memref<41xf32, #tpu.memory_space<smem>>
    %c23_80 = arith.constant 23 : index
    %c0_81 = arith.constant 0 : index
    %181 = vector.load %arg6[%c23_80, %c0_81] : memref<64x1xf32, #tpu.memory_space<vmem>>, vector<16x1xf32>
    %182 = vector.broadcast %180 : f32 to vector<16x1xf32>
    %183 = arith.mulf %182, %181 : vector<16x1xf32>
    %c20_82 = arith.constant 20 : index
    %184 = memref.load %arg3[%c20_82] : memref<41xf32, #tpu.memory_space<smem>>
    %c24_83 = arith.constant 24 : index
    %c0_84 = arith.constant 0 : index
    %185 = vector.load %arg6[%c24_83, %c0_84] : memref<64x1xf32, #tpu.memory_space<vmem>>, vector<16x1xf32>
    %186 = vector.broadcast %184 : f32 to vector<16x1xf32>
    %187 = arith.mulf %186, %185 : vector<16x1xf32>
    %c21_85 = arith.constant 21 : index
    %188 = memref.load %arg3[%c21_85] : memref<41xf32, #tpu.memory_space<smem>>
    %c25_86 = arith.constant 25 : index
    %c0_87 = arith.constant 0 : index
    %189 = vector.load %arg6[%c25_86, %c0_87] : memref<64x1xf32, #tpu.memory_space<vmem>>, vector<16x1xf32>
    %190 = vector.broadcast %188 : f32 to vector<16x1xf32>
    %191 = arith.mulf %190, %189 : vector<16x1xf32>
    %c22_88 = arith.constant 22 : index
    %192 = memref.load %arg3[%c22_88] : memref<41xf32, #tpu.memory_space<smem>>
    %c26_89 = arith.constant 26 : index
    %c0_90 = arith.constant 0 : index
    %193 = vector.load %arg6[%c26_89, %c0_90] : memref<64x1xf32, #tpu.memory_space<vmem>>, vector<16x1xf32>
    %194 = vector.broadcast %192 : f32 to vector<16x1xf32>
    %195 = arith.mulf %194, %193 : vector<16x1xf32>
    %c23_91 = arith.constant 23 : index
    %196 = memref.load %arg3[%c23_91] : memref<41xf32, #tpu.memory_space<smem>>
    %c27_92 = arith.constant 27 : index
    %c0_93 = arith.constant 0 : index
    %197 = vector.load %arg6[%c27_92, %c0_93] : memref<64x1xf32, #tpu.memory_space<vmem>>, vector<16x1xf32>
    %198 = vector.broadcast %196 : f32 to vector<16x1xf32>
    %199 = arith.mulf %198, %197 : vector<16x1xf32>
    %c24_94 = arith.constant 24 : index
    %200 = memref.load %arg3[%c24_94] : memref<41xf32, #tpu.memory_space<smem>>
    %c28_95 = arith.constant 28 : index
    %c0_96 = arith.constant 0 : index
    %201 = vector.load %arg6[%c28_95, %c0_96] : memref<64x1xf32, #tpu.memory_space<vmem>>, vector<16x1xf32>
    %202 = vector.broadcast %200 : f32 to vector<16x1xf32>
    %203 = arith.mulf %202, %201 : vector<16x1xf32>
    %c25_97 = arith.constant 25 : index
    %204 = memref.load %arg3[%c25_97] : memref<41xf32, #tpu.memory_space<smem>>
    %c29_98 = arith.constant 29 : index
    %c0_99 = arith.constant 0 : index
    %205 = vector.load %arg6[%c29_98, %c0_99] : memref<64x1xf32, #tpu.memory_space<vmem>>, vector<16x1xf32>
    %206 = vector.broadcast %204 : f32 to vector<16x1xf32>
    %207 = arith.mulf %206, %205 : vector<16x1xf32>
    %c26_100 = arith.constant 26 : index
    %208 = memref.load %arg3[%c26_100] : memref<41xf32, #tpu.memory_space<smem>>
    %c30_101 = arith.constant 30 : index
    %c0_102 = arith.constant 0 : index
    %209 = vector.load %arg6[%c30_101, %c0_102] : memref<64x1xf32, #tpu.memory_space<vmem>>, vector<16x1xf32>
    %210 = vector.broadcast %208 : f32 to vector<16x1xf32>
    %211 = arith.mulf %210, %209 : vector<16x1xf32>
    %c27_103 = arith.constant 27 : index
    %212 = memref.load %arg3[%c27_103] : memref<41xf32, #tpu.memory_space<smem>>
    %c31_104 = arith.constant 31 : index
    %c0_105 = arith.constant 0 : index
    %213 = vector.load %arg6[%c31_104, %c0_105] : memref<64x1xf32, #tpu.memory_space<vmem>>, vector<16x1xf32>
    %214 = vector.broadcast %212 : f32 to vector<16x1xf32>
    %215 = arith.mulf %214, %213 : vector<16x1xf32>
    %c28_106 = arith.constant 28 : index
    %216 = memref.load %arg3[%c28_106] : memref<41xf32, #tpu.memory_space<smem>>
    %c32_107 = arith.constant 32 : index
    %c0_108 = arith.constant 0 : index
    %217 = vector.load %arg6[%c32_107, %c0_108] : memref<64x1xf32, #tpu.memory_space<vmem>>, vector<16x1xf32>
    %218 = vector.broadcast %216 : f32 to vector<16x1xf32>
    %219 = arith.mulf %218, %217 : vector<16x1xf32>
    %c29_109 = arith.constant 29 : index
    %220 = memref.load %arg3[%c29_109] : memref<41xf32, #tpu.memory_space<smem>>
    %c33_110 = arith.constant 33 : index
    %c0_111 = arith.constant 0 : index
    %221 = vector.load %arg6[%c33_110, %c0_111] : memref<64x1xf32, #tpu.memory_space<vmem>>, vector<16x1xf32>
    %222 = vector.broadcast %220 : f32 to vector<16x1xf32>
    %223 = arith.mulf %222, %221 : vector<16x1xf32>
    %c30_112 = arith.constant 30 : index
    %224 = memref.load %arg3[%c30_112] : memref<41xf32, #tpu.memory_space<smem>>
    %c34_113 = arith.constant 34 : index
    %c0_114 = arith.constant 0 : index
    %225 = vector.load %arg6[%c34_113, %c0_114] : memref<64x1xf32, #tpu.memory_space<vmem>>, vector<16x1xf32>
    %226 = vector.broadcast %224 : f32 to vector<16x1xf32>
    %227 = arith.mulf %226, %225 : vector<16x1xf32>
    %c31_115 = arith.constant 31 : index
    %228 = memref.load %arg3[%c31_115] : memref<41xf32, #tpu.memory_space<smem>>
    %c35_116 = arith.constant 35 : index
    %c0_117 = arith.constant 0 : index
    %229 = vector.load %arg6[%c35_116, %c0_117] : memref<64x1xf32, #tpu.memory_space<vmem>>, vector<16x1xf32>
    %230 = vector.broadcast %228 : f32 to vector<16x1xf32>
    %231 = arith.mulf %230, %229 : vector<16x1xf32>
    %c32_118 = arith.constant 32 : index
    %232 = memref.load %arg3[%c32_118] : memref<41xf32, #tpu.memory_space<smem>>
    %c36_119 = arith.constant 36 : index
    %c0_120 = arith.constant 0 : index
    %233 = vector.load %arg6[%c36_119, %c0_120] : memref<64x1xf32, #tpu.memory_space<vmem>>, vector<16x1xf32>
    %234 = vector.broadcast %232 : f32 to vector<16x1xf32>
    %235 = arith.mulf %234, %233 : vector<16x1xf32>
    %c33_121 = arith.constant 33 : index
    %236 = memref.load %arg3[%c33_121] : memref<41xf32, #tpu.memory_space<smem>>
    %c37_122 = arith.constant 37 : index
    %c0_123 = arith.constant 0 : index
    %237 = vector.load %arg6[%c37_122, %c0_123] : memref<64x1xf32, #tpu.memory_space<vmem>>, vector<16x1xf32>
    %238 = vector.broadcast %236 : f32 to vector<16x1xf32>
    %239 = arith.mulf %238, %237 : vector<16x1xf32>
    %c34_124 = arith.constant 34 : index
    %240 = memref.load %arg3[%c34_124] : memref<41xf32, #tpu.memory_space<smem>>
    %c38_125 = arith.constant 38 : index
    %c0_126 = arith.constant 0 : index
    %241 = vector.load %arg6[%c38_125, %c0_126] : memref<64x1xf32, #tpu.memory_space<vmem>>, vector<16x1xf32>
    %242 = vector.broadcast %240 : f32 to vector<16x1xf32>
    %243 = arith.mulf %242, %241 : vector<16x1xf32>
    %c35_127 = arith.constant 35 : index
    %244 = memref.load %arg3[%c35_127] : memref<41xf32, #tpu.memory_space<smem>>
    %c39_128 = arith.constant 39 : index
    %c0_129 = arith.constant 0 : index
    %245 = vector.load %arg6[%c39_128, %c0_129] : memref<64x1xf32, #tpu.memory_space<vmem>>, vector<16x1xf32>
    %246 = vector.broadcast %244 : f32 to vector<16x1xf32>
    %247 = arith.mulf %246, %245 : vector<16x1xf32>
    %c36_130 = arith.constant 36 : index
    %248 = memref.load %arg3[%c36_130] : memref<41xf32, #tpu.memory_space<smem>>
    %c40_131 = arith.constant 40 : index
    %c0_132 = arith.constant 0 : index
    %249 = vector.load %arg6[%c40_131, %c0_132] : memref<64x1xf32, #tpu.memory_space<vmem>>, vector<16x1xf32>
    %250 = vector.broadcast %248 : f32 to vector<16x1xf32>
    %251 = arith.mulf %250, %249 : vector<16x1xf32>
    %c37_133 = arith.constant 37 : index
    %252 = memref.load %arg3[%c37_133] : memref<41xf32, #tpu.memory_space<smem>>
    %c41 = arith.constant 41 : index
    %c0_134 = arith.constant 0 : index
    %253 = vector.load %arg6[%c41, %c0_134] : memref<64x1xf32, #tpu.memory_space<vmem>>, vector<16x1xf32>
    %254 = vector.broadcast %252 : f32 to vector<16x1xf32>
    %255 = arith.mulf %254, %253 : vector<16x1xf32>
    %c38_135 = arith.constant 38 : index
    %256 = memref.load %arg3[%c38_135] : memref<41xf32, #tpu.memory_space<smem>>
    %c42 = arith.constant 42 : index
    %c0_136 = arith.constant 0 : index
    %257 = vector.load %arg6[%c42, %c0_136] : memref<64x1xf32, #tpu.memory_space<vmem>>, vector<16x1xf32>
    %258 = vector.broadcast %256 : f32 to vector<16x1xf32>
    %259 = arith.mulf %258, %257 : vector<16x1xf32>
    %c39_137 = arith.constant 39 : index
    %260 = memref.load %arg3[%c39_137] : memref<41xf32, #tpu.memory_space<smem>>
    %c43 = arith.constant 43 : index
    %c0_138 = arith.constant 0 : index
    %261 = vector.load %arg6[%c43, %c0_138] : memref<64x1xf32, #tpu.memory_space<vmem>>, vector<16x1xf32>
    %262 = vector.broadcast %260 : f32 to vector<16x1xf32>
    %263 = arith.mulf %262, %261 : vector<16x1xf32>
    %c40_139 = arith.constant 40 : index
    %264 = memref.load %arg3[%c40_139] : memref<41xf32, #tpu.memory_space<smem>>
    %c44 = arith.constant 44 : index
    %c0_140 = arith.constant 0 : index
    %265 = vector.load %arg6[%c44, %c0_140] : memref<64x1xf32, #tpu.memory_space<vmem>>, vector<16x1xf32>
    %266 = vector.broadcast %264 : f32 to vector<16x1xf32>
    %267 = arith.mulf %266, %265 : vector<16x1xf32>
    %268 = arith.addf %107, %111 : vector<16x1xf32>
    %269 = arith.addf %115, %119 : vector<16x1xf32>
    %270 = arith.addf %123, %127 : vector<16x1xf32>
    %271 = arith.addf %131, %135 : vector<16x1xf32>
    %272 = arith.addf %139, %143 : vector<16x1xf32>
    %273 = arith.addf %147, %151 : vector<16x1xf32>
    %274 = arith.addf %155, %159 : vector<16x1xf32>
    %275 = arith.addf %163, %167 : vector<16x1xf32>
    %276 = arith.addf %171, %175 : vector<16x1xf32>
    %277 = arith.addf %179, %183 : vector<16x1xf32>
    %278 = arith.addf %187, %191 : vector<16x1xf32>
    %279 = arith.addf %195, %199 : vector<16x1xf32>
    %280 = arith.addf %203, %207 : vector<16x1xf32>
    %281 = arith.addf %211, %215 : vector<16x1xf32>
    %282 = arith.addf %219, %223 : vector<16x1xf32>
    %283 = arith.addf %227, %231 : vector<16x1xf32>
    %284 = arith.addf %235, %239 : vector<16x1xf32>
    %285 = arith.addf %243, %247 : vector<16x1xf32>
    %286 = arith.addf %251, %255 : vector<16x1xf32>
    %287 = arith.addf %259, %263 : vector<16x1xf32>
    %288 = arith.addf %268, %269 : vector<16x1xf32>
    %289 = arith.addf %270, %271 : vector<16x1xf32>
    %290 = arith.addf %272, %273 : vector<16x1xf32>
    %291 = arith.addf %274, %275 : vector<16x1xf32>
    %292 = arith.addf %276, %277 : vector<16x1xf32>
    %293 = arith.addf %278, %279 : vector<16x1xf32>
    %294 = arith.addf %280, %281 : vector<16x1xf32>
    %295 = arith.addf %282, %283 : vector<16x1xf32>
    %296 = arith.addf %284, %285 : vector<16x1xf32>
    %297 = arith.addf %286, %287 : vector<16x1xf32>
    %298 = arith.addf %288, %289 : vector<16x1xf32>
    %299 = arith.addf %290, %291 : vector<16x1xf32>
    %300 = arith.addf %292, %293 : vector<16x1xf32>
    %301 = arith.addf %294, %295 : vector<16x1xf32>
    %302 = arith.addf %296, %297 : vector<16x1xf32>
    %303 = arith.addf %298, %299 : vector<16x1xf32>
    %304 = arith.addf %300, %301 : vector<16x1xf32>
    %305 = arith.addf %302, %267 : vector<16x1xf32>
    %306 = arith.addf %303, %304 : vector<16x1xf32>
    %307 = arith.addf %306, %305 : vector<16x1xf32>
    %308 = arith.negf %307 : vector<16x1xf32>
    %309 = math.exp %308 : vector<16x1xf32>
    %cst_141 = arith.constant 1.000000e+00 : f32
    %310 = vector.broadcast %cst_141 : f32 to vector<16x1xf32>
    %311 = arith.addf %310, %309 : vector<16x1xf32>
    %312 = arith.divf %310, %311 : vector<16x1xf32>
    %313 = vector.broadcast %312 : vector<16x1xf32> to vector<16x32xf32>
    %314 = arith.mulf %313, %1 : vector<16x32xf32>
    %c0_142 = arith.constant 0 : index
    %c0_143 = arith.constant 0 : index
    %c0_144 = arith.constant 0 : index
    %315 = vector.load %arg4[%c0_142, %c0_143, %c0_144] : memref<1x16x32xf32, #tpu.memory_space<vmem>>, vector<1x16x32xf32>
    %316 = vector.shape_cast %315 : vector<1x16x32xf32> to vector<16x32xf32>
    %317 = vector.shape_cast %314 : vector<16x32xf32> to vector<1x16x32xf32>
    tpu.vector_store %arg4[%c0_142, %c0_143, %c0_144], %317 {strides = array<i32>} : memref<1x16x32xf32, #tpu.memory_space<vmem>>, vector<1x16x32xf32>,
    return
  }
  func.func @transform_0(%arg0: i32) -> (i32, i32, i32) {
    %c0_i32 = arith.constant 0 : i32
    %c0_i32_0 = arith.constant 0 : i32
    %c0_i32_1 = arith.constant 0 : i32
    return %arg0, %c0_i32, %c0_i32_0 : i32, i32, i32
  }
  func.func @transform_1(%arg0: i32) -> (i32, i32) {
    %c0_i32 = arith.constant 0 : i32
    %c0_i32_0 = arith.constant 0 : i32
    %c0_i32_1 = arith.constant 0 : i32
    return %c0_i32, %c0_i32_0 : i32, i32
  }
  func.func @transform_2(%arg0: i32) -> i32 {
    %c0_i32 = arith.constant 0 : i32
    %c0_i32_0 = arith.constant 0 : i32
    return %c0_i32 : i32
  }
  func.func @transform_3(%arg0: i32) -> (i32, i32, i32) {
    %c0_i32 = arith.constant 0 : i32
    %c0_i32_0 = arith.constant 0 : i32
    %c0_i32_1 = arith.constant 0 : i32
    return %arg0, %c0_i32, %c0_i32_0 : i32, i32, i32
  }
}

</mosaic_0001>

<bundles_post_ra>
// kernel: tpu_custom_call.1
= control target key start
LH: loop header
LB: loop body
LE: loop exit
PB: predicated region body
PF: predicated region fallthrough
CT: control target
= control target key end

     0   :  { %s2371_s0 = inlined_call_operand.hbm [shape: f32[2,16,32], index: 0, kind: input, shape index: {}]   ;;  %s2372_s1 = inlined_call_operand.hbm [shape: f32[41,16], index: 1, kind: input, shape index: {}]   ;;  %s2373_s2 = inlined_call_operand.hbm [shape: f32[41], index: 2, kind: input, shape index: {}]   ;;  %s2374_s3 = inlined_call_operand.hbm [shape: f32[2,16,32], index: 3, kind: output, shape index: {}]  }
   0x1   :  { %2408 = sst [smem:[#allocation34_spill]] %s2371_s0 }
   0x2   :  { %2409 = sst [smem:[#allocation35_spill]] %s2372_s1 }
   0x3   :  { %2410 = sst [smem:[#allocation36_spill]] %s2373_s2 }
   0x4   :  { %2411 = sst [smem:[#allocation37_spill]] %s2374_s3 }
   0x5   :  { %8 = vsyncpa [#allocation5], 0 }
   0x6   :  { %10 = vsyncpa [#allocation5 + $0x1], 0 }
   0x7   :  { %11 = vsyncpa [#allocation9], 0 }
   0x8   :  { %12 = vsyncpa [#allocation7], 0 }
   0x9   :  { %13 = vsyncpa [#allocation6], 0 }
   0xa   :  { %15 = vsyncpa [#allocation6 + $0x1], 0  ;;  %s1657_s12 = smov 0   ;;  %s1659_s13 = smov 0  }
   0xb   :  { %s1661_s14 = smov 0   ;;  %s1663_s15 = smov 0  }
   0xc LB: > { %2412 = sst [smem:[#allocation16_spill]] %s1606_s12  ;;  %s1678_s16 = sadd.s32 4294967295, %s1618_s15   ;;  %s1618_s15 = sphi %s1663_s15, %s2475_s15   ;;  %s1614_s14 = sphi %s1661_s14, %s2478_s14   ;;  %s1610_s13 = sphi %s1659_s13, %s2477_s13   ;;  %s1606_s12 = sphi %s1657_s12, %s2476_s12  }
   0xd   : > { %2413 = sst [smem:[#allocation17_spill]] %s1610_s13  ;;  %s1256_s17 = sadd.s32 4294967294, %s1618_s15  }
   0xe   : > { %2414 = sst [smem:[#allocation18_spill]] %s1614_s14  ;;  %p41_p0 = scmp.ne.s32.totalorder %s1610_s13, %s1606_s12 }
   0xf   : > { %2415 = sst [smem:[#allocation19_spill]] %s1618_s15  ;;  %p2375_p1 = scmp.eq.s32.totalorder %s1678_s16, 0 }
  0x10   : > { %2416 = sst [smem:[#allocation20_spill]] %s1678_s16  ;;  %p113_p3 = scmp.eq.s32.totalorder %s1256_s17, 1 }
  0x11   : > { %p1687_p4 = por %p2375_p1, %p41_p0  ;;  %p1257_p5 = scmp.ge.s32.totalorder %s1618_s15, 1 }
  0x12   : > { %p1692_p6 = por %p113_p3, %p41_p0  ;;  %p120_p7 = scmp.lt.s32.totalorder %s1618_s15, 3 }
  0x13   : > { %s2417_s18 = scalar_select %p1687_p4, 1, 0 }
  0x14   : > { %s2418_s19 = scalar_select %p1692_p6, 1, 0 }
  0x15   : > { %p1697_p8 = pnand %p1257_p5, %p120_p7  ;;  %s1620_s21 = smov [#allocation8]  }
  0x16   : > { %2419 = sst [smem:[#allocation21_spill]] %s2418_s19  ;;  %s132_s22 = sshll.u32 %s1620_s21, 4  ;;  %s133_s22 = int_to_ptr.vmem [resolvable:$true] %s132_s22 }
  0x17   : > { %s2420_s20 = scalar_select %p1697_p8, 1, 0 }
  0x18   : > { %p1365_p9 = pneg %p1697_p8  ;;  %s1711_s24 = sadd.s32 1, %s1618_s15  }
  0x19   : > { %2422 = sst [smem:[#allocation22_spill]] %s1711_s24  ;;  %s25_s25 = ssub.s32 %s1618_s15, %s1711_s24 }
  0x1a   : > { %p1706_p11 = pnand %p1365_p9, %p2375_p1  ;;  %s2423_s1 = sld [smem:[#allocation35_spill]] }
  0x1c   : > { %p1475_p13 = pneg %p1706_p11 }
  0x20   : > { %s1473_s28 = scalar_lea.hbm %s2423_s1, 768 }
  0x21   : > { %p1474_p12 = scmp.ne.s32.totalorder %s2423_s1, %s1473_s28  ;;  %p1480_p5 = scmp.lt.u32.totalorder %s1473_s28, %s2423_s1 }
  0x23   : > { %p1476_p0 = pnand %p1475_p13, %p1474_p12 }
  0x25   : > { %p1477_p3 = pneg %p1476_p0 }
  0x27   : > { %p1482_p7 = pnand %p1480_p5, %p1477_p3 }
  0x29   : > { %1485 = shalt.err (!%p1482_p7)
}
  0x2a   : > { %s1486_s6 = scalar_lea.vmem %s133_s22, 768  ;;  %p1494_p2 = scmp.lt.s32.totalorder %s133_s22, %s133_s22 }
  0x2b   : > { %p1487_p9 = scmp.ne.s32.totalorder %s133_s22, %s1486_s6  ;;  %p1495_p6 = scmp.lt.s32.totalorder %s1486_s6, %s1486_s6 }
  0x2d   : > { %p1489_p10 = pnand %p1487_p9, %p1475_p13  ;;  %p1496_p4 = por %p1495_p6, %p1494_p2 }
  0x2f   : > { %p1490_p1 = pneg %p1489_p10 }
  0x31   : > { %p1497_p8 = pnand %p1496_p4, %p1490_p1 }
  0x33   : > { %1500 = shalt.err (!%p1497_p8)
}
  0x34   : > { %s1621_s7 = smov 128   ;;  %s1622_s8 = smov 8  }
  0x35   : > { %1368 = dma.hbm_to_vmem [thread:$0]  (!%p1706_p11), %s2423_s1, 768, %s133_s22, [#allocation9], %s1621_s7, %s1621_s7, %s1622_s8  }
  0x36   : > { %s2424_s2 = sld [smem:[#allocation36_spill]] }
  0x3c   : > { %s1501_s21 = scalar_lea.hbm %s2424_s2, 16 }
  0x3d   : > { %p1502_p1 = scmp.ne.s32.totalorder %s2424_s2, %s1501_s21  ;;  %p1508_p6 = scmp.lt.u32.totalorder %s1501_s21, %s2424_s2 }
  0x3f   : > { %p1504_p2 = pnand %p1502_p1, %p1475_p13 }
  0x41   : > { %p1505_p4 = pneg %p1504_p2 }
  0x43   : > { %p1510_p8 = pnand %p1508_p6, %p1505_p4 }
  0x45   : > { %1513 = shalt.err (!%p1510_p8)
}
  0x46   : > { %s1623_s30 = smov [#allocation10]   ;;  %p26_p10 = scmp.eq.s32.totalorder %s25_s25, 0 }
  0x47   : > { %1371 = dma.hbm_to_smem (!%p1706_p11), %s2424_s2, 16, %s1623_s30, [#allocation7]  }
  0x48   : > { %s28_s5 = sadd.s32 1, %s1614_s14  ;;  %p35_p12 = scmp.ne.s32.totalorder %s1614_s14, %s1610_s13 }
  0x49   : > { %p36_p13 = scmp.eq.s32.totalorder %s1618_s15, 0  ;;  %p2426_p3 = scmp.eq.s32.totalorder %s1678_s16, 1 }
  0x4a   : > { %s1765_s23 = scalar_select %p26_p10, %s1614_s14, %s28_s5  }
  0x4b   : > { %p37_p0 = por %p36_p13, %p35_p12  ;;  %p1769_p5 = por %p2426_p3, %p35_p12 }
  0x4c   : > { %2425 = sst [smem:[#allocation23_spill]] %s1765_s23  ;;  %p1382_p7 = scmp.lt.s32.totalorder %s1618_s15, 2 }
  0x4d   : > { %s2427_s6 = scalar_select %p1769_p5, 1, 0 }
  0x4e   : > { %s155_s9 = sand.u32 1, %s1614_s14   ;;  %s1324_s11 = sshll.u32 %s1618_s15, 8 }
  0x4f   : > { %2428 = sst [smem:[#allocation24_spill]] %s2427_s6  ;;  %s1261_s10 = sshll.u32 %s155_s9, 4 }
  0x50   : > { %s2429_s0 = sld [smem:[#allocation34_spill]]  ;;  %s159_s25 = scalar_lea.vmem [#allocation4], %s1261_s10 }
  0x51   : > { %s166_s27 = sshll.u32 %s159_s25, 4  ;;  %p1783_p11 = pnand %p1382_p7, %p37_p0  ;;  %s1781_s27 = int_to_ptr.vmem [resolvable:$true] %s166_s27 }
  0x52   : > { %s1787_s29 = scalar_lea.sflag [#allocation5], %s155_s9 }
  0x53   : > { %p1516_p1 = pneg %p1783_p11 }
  0x56   : > { %s1779_s26 = scalar_lea.hbm %s2429_s0, %s1324_s11  ;;  %s1519_s5 = scalar_lea.hbm %s2429_s0, 512 }
  0x57   : > { %s1514_s30 = scalar_lea.hbm %s1779_s26, 256  ;;  %p1520_p6 = scmp.lt.u32.totalorder %s1779_s26, %s2429_s0 }
  0x58   : > { %p1515_p9 = scmp.ne.s32.totalorder %s1779_s26, %s1514_s30  ;;  %p1521_p8 = scmp.lt.u32.totalorder %s1519_s5, %s1514_s30 }
  0x59   : > { %p1523_p12 = scmp.lt.u32.totalorder %s1514_s30, %s1779_s26 }
  0x5a   : > { %p1517_p2 = pnand %p1516_p1, %p1515_p9  ;;  %p1522_p10 = por %p1521_p8, %p1520_p6 }
  0x5c   : > { %p1518_p4 = pneg %p1517_p2  ;;  %p1524_p13 = por %p1523_p12, %p1522_p10 }
  0x5e   : > { %p1525_p0 = pnand %p1524_p13, %p1518_p4 }
  0x60   : > { %1528 = shalt.err (!%p1525_p0)
}
  0x61   : > { %s1529_s9 = scalar_lea.vmem %s1781_s27, 256  ;;  %s1624_s17 = smov [#allocation4]  }
  0x62   : > { %p1530_p3 = scmp.ne.s32.totalorder %s1781_s27, %s1529_s9  ;;  %s1534_s21 = sshll.u32 %s1624_s17, 4  ;;  %s1535_s21 = int_to_ptr.vmem [resolvable:$false] %s1534_s21 }
  0x63   : > { %s1536_s25 = scalar_lea.vmem %s1535_s21, 512  ;;  %p1537_p2 = scmp.lt.s32.totalorder %s1781_s27, %s1535_s21 }
  0x64   : > { %p1532_p7 = pnand %p1530_p3, %p1516_p1  ;;  %p1538_p6 = scmp.lt.s32.totalorder %s1536_s25, %s1529_s9 }
  0x66   : > { %p1533_p9 = pneg %p1532_p7  ;;  %p1539_p8 = por %p1538_p6, %p1537_p2 }
  0x68   : > { %p1540_p10 = pnand %p1539_p8, %p1533_p9 }
  0x6a   : > { %1543 = shalt.err (!%p1540_p10)
}
  0x6b   : > { %1375 = dma.hbm_to_vmem [thread:$0]  (!%p1783_p11), %s1779_s26, 256, %s1781_s27, %s1787_s29, %s1621_s7, %s1621_s7, %s1622_s8  }
  0x6c   : > { %p2431_p1 = scmp.ne.s32.totalorder %s2420_s20, 0 }
  0x6e   : > { %178 = sbr.rel (%p2431_p1) target bundleno = 1450 (0x5aa), region = 32 }
  0x75   : > { %s1821_s30 = sand.u32 1, %s1610_s13   ;;  %p2434_p4 = scmp.ne.s32.totalorder %s2417_s18, 0 }
  0x76   : > { %2432 = sst [smem:[#allocation25_spill]] %s1821_s30  ;;  %s2378_s22 = sshll.u32 %s1821_s30, 4 }
  0x77   : > { %s181_s4 = scalar_lea.sflag [#allocation5], %s1821_s30  ;;  %s1827_s28 = scalar_lea.vmem [#allocation4], %s2378_s22 }
  0x78   : > { %2433 = sst [smem:[#allocation26_spill]] %s1827_s28 }
  0x79   : > { %1589 = dma.done.wait (%p2434_p4), %s181_s4, 256  }
  0x7a   : > { %1591 = vsyncadd (%p2434_p4), %s181_s4, 4294967040  ;;  %p2435_p11 = scmp.eq.s32.totalorder %s1678_s16, 0 }
  0x7c   : > { %1593 = dma.done.wait (%p2435_p11), [#allocation9], 768   ;;  %p2436_p12 = pmov %p2435_p11 }
  0x7d   : > { %p2437_p13 = pmov %p2435_p11 }
  0x7e   : > { %1595 = vsyncadd (%p2436_p12), [#allocation9], 4294966528 }
  0x7f   : > { %1597 = dma.done.wait (%p2437_p13), [#allocation7], 16   ;;  %p2438_p0 = pmov %p2435_p11 }
  0x81   : > { %1599 = vsyncadd (%p2438_p0), [#allocation7], 4294967280 }
  0x82   : > { %197 = sfence }
  0x83   : > { %v1842_v0 = vld [vmem:[%s1827_s28] sm:$0xff]  ;;  %v1845_v1 = vld [vmem:[%s1827_s28 + $0x8] sm:$0xff]  ;;  %vm224_vm0 = vcmask 130048   ;;  %vm344_vm1 = vcmask 1047808   ;;  %vm346_vm2 = vcmask 261120   ;;  %v1625_v9 = vmov 0.0  }
  0x84   : > { %v218_v2 = vld [vmem:[#allocation8] sm:$0xff]  ;;  %v1347_v3 = vpack.c.bf16 %v1845_v1, %v1842_v0  ;;  %v220_v4 = vld [vmem:[#allocation8 + $0x10] sm:$0xff]  ;;  %v219_v5 = vld [vmem:[#allocation8 + $0x8] sm:$0xff]  ;;  %348 = vst.msk [vmem:[#allocation2 + $0x20] sm:$0xff] %vm344_vm1, %v1625_v9  ;;  %vm356_vm3 = vcmask 1040640   ;;  %vm358_vm4 = vcmask 253952  }
  0x85   : > { %1338 = vmatprep.mubr.msk.f32.mxu0 %vm224_vm0, %v218_v2  ;;  %1341 = vmatprep.mubr.msk.f32.mxu1 %vm224_vm0, %v220_v4  ;;  %v221_v6 = vld [vmem:[#allocation8 + $0x18] sm:$0xff]  ;;  %v222_v7 = vld [vmem:[#allocation8 + $0x20] sm:$0xff]  ;;  %v223_v8 = vld [vmem:[#allocation8 + $0x28] sm:$0x1]  ;;  %338 = vst [vmem:[#allocation2] sm:$0xff] %v1625_v9  ;;  %s1626_s18 = smov 127  }
  0x86   : > { %1348 = vmatprep.subr.bf16.mxu0 %v1347_v3  ;;  %1351 = vmatprep.subr.bf16.mxu1 %v1347_v3  ;;  %339 = vst [vmem:[#allocation2 + $0x18] sm:$0xff] %v1625_v9  ;;  %340 = vst [vmem:[#allocation2 + $0x30] sm:$0xff] %v1625_v9  ;;  %s1627_s20 = smov 126   ;;  %vm433_vm5 = vcmask 1039360   ;;  %s1628_s7 = smov 124   ;;  %vm594_vm6 = vcmask 1031168  }
  0x87   : > { %1350 = vmatpush3.bf16.msra.mxu0 %v1347_v3  ;;  %1352 = vmatpush3.bf16.msra.mxu1 %v1347_v3  ;;  %345 = vst.msk [vmem:[#allocation2 + $0x8] sm:$0xff] %vm344_vm1, %v1625_v9  ;;  %350 = vst.msk [vmem:[#allocation2 + $0x38] sm:$0xff] %vm344_vm1, %v1625_v9  ;;  %s1629_s8 = smov 120   ;;  %vm675_vm7 = vcmask 1014784   ;;  %s1630_s26 = smov 112   ;;  %vm714_vm8 = vcmask 982016  }
  0x88   : > { %352 = vst.msk [vmem:[#allocation2 + $0x50] sm:$0xff] %vm344_vm1, %v1625_v9  ;;  %354 = vst.msk [vmem:[#allocation2 + $0x68] sm:$0xff] %vm344_vm1, %v1625_v9  ;;  %s1631_s27 = smov 96   ;;  %vm737_vm9 = vcmask 916480   ;;  %vm786_vm10 = vcmask 7168   ;;  %s1632_s29 = smov 20  }
  0x89   : > { %357 = vst.msk [vmem:[#allocation2 + $0x80] sm:$0x1] %vm356_vm3, %v1625_v9  ;;  %vm775_vm11 = vcmask 162816   ;;  %s1979_s5 = sld [smem:[#allocation10 + $0x14]]  ;;  %s1981_s10 = sld [smem:[#allocation10 + $0x15]] }
  0x8a   : > { %1339 = vmatmul.mubr.msk.f32.vlgmr.msra.gmra.mrb[0].mxu0 %vm224_vm0, %v219_v5  ;;  %1342 = vmatmul.mubr.msk.f32.vlgmr.msra.gmra.mrb[0].mxu1 %vm224_vm0, %v221_v6  ;;  %787 = vst.msk [vmem:[#allocation3] sm:$0xff] %vm786_vm10, %v1625_v9  ;;  %788 = vst.msk [vmem:[#allocation3 + $0x8] sm:$0xff] %vm786_vm10, %v1625_v9  ;;  %s1983_s11 = sld [smem:[#allocation10 + $0x16]]  ;;  %s1985_s9 = sld [smem:[#allocation10 + $0x17]] }
  0x8b   : > { %1344 = vmatprep.mubr.msk.f32.mxu1 %vm224_vm0, %v222_v7  ;;  %789 = vst.msk [vmem:[#allocation3 + $0x10] sm:$0xff] %vm786_vm10, %v1625_v9  ;;  %790 = vst.msk [vmem:[#allocation3 + $0x28] sm:$0xff] %vm786_vm10, %v1625_v9  ;;  %s1987_s17 = sld [smem:[#allocation10 + $0x18]]  ;;  %s1989_s21 = sld [smem:[#allocation10 + $0x19]] }
  0x8c   : > { %v380_v30 = vld [vmem:[#allocation2 + $0x7] ss:$0 sm:$0xff]  ;;  %791 = vst.msk [vmem:[#allocation3 + $0x30] sm:$0xff] %vm786_vm10, %v1625_v9  ;;  %792 = vst.msk [vmem:[#allocation3 + $0x38] sm:$0xff] %vm786_vm10, %v1625_v9  ;;  %s1991_s25 = sld [smem:[#allocation10 + $0x1a]]  ;;  %s1993_s4 = sld [smem:[#allocation10 + $0x1c]] }
  0x8d   : > { %v396_v18 = vld [vmem:[#allocation2 + $0x1f] ss:$0 sm:$0xff]  ;;  %v392_v24 = vld [vmem:[#allocation2 + $0x1d] ss:$0 sm:$0xff]  ;;  %v404_v25 = vld [vmem:[#allocation2 + $0x33] ss:$0 sm:$0xff] }
  0x8e   : > { %1345 = vmatmul.mubr.msk.f32.gmra.mrb[2].mxu1 %vm224_vm0, %v223_v8  ;;  %v1438_v26 = vpack.i.bf16 %v404_v25, %v392_v24  ;;  %v388_v35 = vld [vmem:[#allocation2 + $0x1b] ss:$0 sm:$0xff]  ;;  %v384_v50 = vld [vmem:[#allocation2 + $0x19] ss:$0 sm:$0xff]  ;;  %v400_v51 = vld [vmem:[#allocation2 + $0x31] ss:$0 sm:$0xff] }
  0x8f   : > { %v1433_v38 = vpack.i.bf16 %v388_v35, %v380_v30  ;;  %v1448_v54 = vpack.i.bf16 %v400_v51, %v384_v50  ;;  %v394_v55 = vld [vmem:[#allocation2 + $0x1e] ss:$0 sm:$0xff]  ;;  %s2009_s22 = sld [smem:[#allocation10 + $0x22]]  ;;  %s2011_s0 = sld [smem:[#allocation10 + $0x23]] }
  0x90   : > { %s2013_s1 = sld [smem:[#allocation10 + $0x6]]  ;;  %s2015_s2 = sld [smem:[#allocation10 + $0x7]] }
  0x91   : > { %s2017_s23 = sld [smem:[#allocation10 + $0x8]]  ;;  %s2019_s14 = sld [smem:[#allocation10 + $0x9]] }
  0x92   : > { %s2021_s13 = sld [smem:[#allocation10 + $0xa]]  ;;  %s2023_s24 = sld [smem:[#allocation10]] }
  0x93   : > { %s2032_s15 = sld [smem:[#allocation10 + $0x1]]  ;;  %s2034_s19 = sld [smem:[#allocation10 + $0x2]] }
  0x94   : > { %s2044_s12 = sld [smem:[#allocation10 + $0x3]]  ;;  %s2066_s6 = sld [smem:[#allocation10 + $0x24]] }
  0x95   : > { %s2052_s3 = sld [smem:[#allocation10 + $0xb]]  ;;  %s2068_s28 = sld [smem:[#allocation10 + $0x25]] }
  0x96   : > { %s2082_s16 = sld [smem:[#allocation10 + $0x26]]  ;;  %s2084_s30 = sld [smem:[#allocation10 + $0x27]] }
  0x97   : > { %2440 = sst [smem:[#allocation28_spill]] %s2019_s14 }
  0x98   : > { %2441 = sst [smem:[#allocation29_spill]] %s2021_s13 }
 0x15d   : > { %v1340_v10 = vpop.f32.mrb[0].mxu0  ;;  %v1343_v11 = vpop.f32.mrb[0].mxu1 }
 0x15e   : > { %361 = vst.msk [vmem:[#allocation2 + $0x20] sm:$0xff] %vm346_vm2, %v1340_v10  ;;  %363 = vst.msk [vmem:[#allocation2 + $0x50] sm:$0xff] %vm346_vm2, %v1343_v11  ;;  %v319_v12 = vpop.f32.mrb[1].mxu1  ;;  %v309_v13 = vpop.f32.mrb[1].mxu0  ;;  %v372_v11 = vld [vmem:[#allocation2 + $0x3] ss:$0 sm:$0xff] }
 0x15f   : > { %362 = vst.msk [vmem:[#allocation2 + $0x38] sm:$0xff] %vm346_vm2, %v319_v12  ;;  %360 = vst.msk [vmem:[#allocation2 + $0x8] sm:$0xff] %vm346_vm2, %v309_v13  ;;  %v376_v12 = vld [vmem:[#allocation2 + $0x5] ss:$0 sm:$0xff] }
 0x161   : > { %v1346_v14 = vpop.f32.mrb[2].mxu1 }
 0x162   : > { %365 = vst.msk [vmem:[#allocation2 + $0x80] sm:$0x1] %vm358_vm4, %v1346_v14  ;;  %v329_v15 = vpop.f32.mrb[3].mxu1  ;;  %v1443_v14 = vpack.i.bf16 %v376_v12, %v372_v11 }
 0x163   : > { %364 = vst.msk [vmem:[#allocation2 + $0x68] sm:$0xff] %vm346_vm2, %v329_v15 }
 0x165   : > { %v417_v16 = vld [vmem:[#allocation2 + $0x57] ss:$0 sm:$0xff]  ;;  %v397_v17 = vld [vmem:[#allocation2 + $0x27] ss:$0 sm:$0xff]  ;;  %v415_v19 = vld [vmem:[#allocation2 + $0x55] ss:$0 sm:$0xff] }
 0x166   : > { %564 = vrot.lane.b32.xlu0 %v417_v16, %s1626_s18  ;;  %509 = vrot.lane.b32.xlu1 %v397_v17, %s1626_s18  ;;  %v413_v20 = vld [vmem:[#allocation2 + $0x53] ss:$0 sm:$0xff]  ;;  %v409_v21 = vld [vmem:[#allocation2 + $0x3f] ss:$0 sm:$0xff]  ;;  %v381_v23 = vld [vmem:[#allocation2 + $0xf] ss:$0 sm:$0xff] }
 0x167   : > { %v405_v27 = vld [vmem:[#allocation2 + $0x3b] ss:$0 sm:$0xff]  ;;  %v411_v28 = vld [vmem:[#allocation2 + $0x51] ss:$0 sm:$0xff]  ;;  %v416_v32 = vld [vmem:[#allocation2 + $0x56] ss:$0 sm:$0xff] }
 0x168   : > { %v395_v34 = vld [vmem:[#allocation2 + $0x26] ss:$0 sm:$0xff]  ;;  %v412_v42 = vld [vmem:[#allocation2 + $0x52] ss:$0 sm:$0xff]  ;;  %v389_v45 = vld [vmem:[#allocation2 + $0x23] ss:$0 sm:$0xff] }
 0x169   : > { %v393_v49 = vld [vmem:[#allocation2 + $0x25] ss:$0 sm:$0xff]  ;;  %v407_v52 = vld [vmem:[#allocation2 + $0x3d] ss:$0 sm:$0xff]  ;;  %v373_v53 = vld [vmem:[#allocation2 + $0xb] ss:$0 sm:$0xff] }
 0x16a   : > { %507 = vrot.lane.b32.xlu0 %v396_v18, %s1626_s18  ;;  %559 = vrot.lane.b32.xlu1 %v415_v19, %s1626_s18  ;;  %v425_v22 = vld [vmem:[#allocation2 + $0x6f] ss:$0 sm:$0xff]  ;;  %v423_v29 = vld [vmem:[#allocation2 + $0x6d] ss:$0 sm:$0xff]  ;;  %v424_v46 = vld [vmem:[#allocation2 + $0x6e] ss:$0 sm:$0xff] }
 0x16b   : > { %v421_v57 = vld [vmem:[#allocation2 + $0x6b] ss:$0 sm:$0xff]  ;;  %v401_v60 = vld [vmem:[#allocation2 + $0x39] ss:$0 sm:$0xff]  ;;  %v408_v61 = vld [vmem:[#allocation2 + $0x3e] ss:$0 sm:$0xff] }
 0x16c   : > { %v379_v62 = vld [vmem:[#allocation2 + $0xe] ss:$0 sm:$0xff]  ;;  %v414_v6 = vld [vmem:[#allocation2 + $0x54] ss:$0 sm:$0xff]  ;;  %v410_v17 = vld [vmem:[#allocation2 + $0x50] ss:$0 sm:$0xff] }
 0x16d   : > { %v377_v25 = vld [vmem:[#allocation2 + $0xd] ss:$0 sm:$0xff]  ;;  %v406_v51 = vld [vmem:[#allocation2 + $0x3c] ss:$0 sm:$0xff] }
 0x16e   : > { %554 = vrot.lane.b32.xlu0 %v413_v20, %s1626_s18  ;;  %544 = vrot.lane.b32.xlu1 %v409_v21, %s1626_s18  ;;  %v387_v20 = vld [vmem:[#allocation2 + $0x22] ss:$0 sm:$0xff] }
 0x172   : > { %584 = vrot.lane.b32.xlu1 %v425_v22, %s1626_s18 }
 0x176   : > { %465 = vrot.lane.b32.xlu1 %v381_v23, %s1626_s18 }
 0x17a   : > { %1439 = vrot.lane.b32.xlu1 %v1438_v26, %s1626_s18  ;;  %v403_v26 = vld [vmem:[#allocation2 + $0x3a] ss:$0 sm:$0xff] }
 0x17e   : > { %531 = vrot.lane.b32.xlu1 %v405_v27, %s1626_s18 }
 0x182   : > { %549 = vrot.lane.b32.xlu1 %v411_v28, %s1626_s18 }
 0x186   : > { %579 = vrot.lane.b32.xlu1 %v423_v29, %s1626_s18 }
 0x1d8   : > { %v565_v31 = vpop.permute.xlu0 %564  ;;  %v510_v33 = vpop.permute.xlu1 %509 }
 0x1d9   : > { %v567_v36 = vadd.f32 %v565_v31, %v416_v32  ;;  %v515_v37 = vadd.f32 %v510_v33, %v395_v34  ;;  %v385_v31 = vld [vmem:[#allocation2 + $0x21] ss:$0 sm:$0xff]  ;;  %v378_v32 = vld [vmem:[#allocation2 + $0x6] ss:$0 sm:$0xff] }
 0x1db   : > { %655 = vrot.lane.b32.xlu0 %v567_v36, %s1627_s20  ;;  %626 = vrot.lane.b32.xlu1 %v515_v37, %s1627_s20 }
 0x1dc   : > { %v508_v39 = vpop.permute.xlu0 %507  ;;  %v560_v40 = vpop.permute.xlu1 %559 }
 0x1dd   : > { %v511_v56 = vsel %vm433_vm5, %v508_v39, %v510_v33  ;;  %v562_v7 = vadd.f32 %v560_v40, %v414_v6 }
 0x1de   : > { %v514_v58 = vadd.f32 %v511_v56, %v394_v55 }
 0x1df   : > { %1434 = vrot.lane.b32.xlu0 %v1433_v38, %s1626_s18  ;;  %v386_v38 = vld [vmem:[#allocation2 + $0x1a] ss:$0 sm:$0xff] }
 0x1e0   : > { %v555_v41 = vpop.permute.xlu0 %554  ;;  %v545_v43 = vpop.permute.xlu1 %544 }
 0x1e1   : > { %v557_v44 = vadd.f32 %v555_v41, %v412_v42  ;;  %v547_v63 = vadd.f32 %v545_v43, %v408_v61  ;;  %v420_v61 = vld [vmem:[#allocation2 + $0x6a] ss:$0 sm:$0xff] }
 0x1e3   : > { %487 = vrot.lane.b32.xlu0 %v389_v45, %s1626_s18  ;;  %650 = vrot.lane.b32.xlu1 %v557_v44, %s1627_s20  ;;  %v402_v44 = vld [vmem:[#allocation2 + $0x32] ss:$0 sm:$0xff] }
 0x1e4   : > { %v585_v47 = vpop.permute.xlu1 %584 }
 0x1e5   : > { %v587_v48 = vadd.f32 %v585_v47, %v424_v46 }
 0x1e7   : > { %498 = vrot.lane.b32.xlu0 %v393_v49, %s1626_s18  ;;  %665 = vrot.lane.b32.xlu1 %v587_v48, %s1627_s20 }
 0x1e8   : > { %v466_v59 = vpop.permute.xlu1 %465 }
 0x1e9   : > { %v471_v2 = vadd.f32 %v466_v59, %v379_v62 }
 0x1eb   : > { %539 = vrot.lane.b32.xlu0 %v407_v52, %s1626_s18  ;;  %443 = vrot.lane.b32.xlu1 %v373_v53, %s1626_s18  ;;  %v390_v53 = vld [vmem:[#allocation2 + $0x1c] ss:$0 sm:$0xff] }
 0x1ec   : > { %v1897_v3 = vpop.permute.xlu1 %1439 }
 0x1ed   : > { %v1442_v37 = vunpack.i.h.bf16 %v1897_v3  ;;  %v1441_v46 = vunpack.i.l.bf16 %v1897_v3 }
 0x1ef   : > { %574 = vrot.lane.b32.xlu0 %v421_v57, %s1626_s18  ;;  %1449 = vrot.lane.b32.xlu1 %v1448_v54, %s1626_s18 }
 0x1f0   : > { %v532_v4 = vpop.permute.xlu1 %531 }
 0x1f1   : > { %v537_v29 = vadd.f32 %v532_v4, %v403_v26  ;;  %v533_v45 = vsel %vm433_vm5, %v1442_v37, %v532_v4  ;;  %v422_v4 = vld [vmem:[#allocation2 + $0x6c] ss:$0 sm:$0xff] }
 0x1f2   : > { %v536_v49 = vadd.f32 %v533_v45, %v402_v44 }
 0x1f3   : > { %624 = vrot.lane.b32.xlu0 %v514_v58, %s1627_s20  ;;  %520 = vrot.lane.b32.xlu1 %v401_v60, %s1626_s18  ;;  %v419_v58 = vld [vmem:[#allocation2 + $0x69] ss:$0 sm:$0xff]  ;;  %v391_v60 = vld [vmem:[#allocation2 + $0x24] ss:$0 sm:$0xff] }
 0x1f4   : > { %v550_v5 = vpop.permute.xlu1 %549 }
 0x1f5   : > { %v552_v18 = vadd.f32 %v550_v5, %v410_v17 }
 0x1f7   : > { %645 = vrot.lane.b32.xlu0 %v547_v63, %s1627_s20  ;;  %604 = vrot.lane.b32.xlu1 %v471_v2, %s1627_s20 }
 0x1f8   : > { %v1899_v8 = vpop.permute.xlu1 %579 }
 0x1f9   : > { %v582_v5 = vadd.f32 %v1899_v8, %v422_v4 }
 0x24d   : > { %v656_v10 = vpop.permute.xlu0 %655  ;;  %v1902_v15 = vpop.permute.xlu1 %626 }
 0x24e   : > { %v658_v13 = vadd.f32 %v656_v10, %v562_v7  ;;  %v368_v7 = vld [vmem:[#allocation2 + $0x1] ss:$0 sm:$0xff] }
 0x250   : > { %699 = vrot.lane.b32.xlu0 %v658_v13, %s1628_s7 }
 0x251   : > { %v1435_v16 = vpop.permute.xlu0 %1434 }
 0x252   : > { %v1436_v24 = vunpack.i.l.bf16 %v1435_v16  ;;  %v1437_v30 = vunpack.i.h.bf16 %v1435_v16  ;;  %v426_v16 = vld [vmem:[#allocation2 + $0x80] ss:$0 sm:$0xff] }
 0x254   : > { %1444 = vrot.lane.b32.xlu0 %v1443_v14, %s1626_s18  ;;  %v467_v33 = vsel %vm433_vm5, %v1436_v24, %v466_v59  ;;  %v371_v24 = vld [vmem:[#allocation2 + $0xa] ss:$0 sm:$0xff] }
 0x255   : > { %v488_v19 = vpop.permute.xlu0 %487  ;;  %v651_v21 = vpop.permute.xlu1 %650  ;;  %v470_v36 = vadd.f32 %v467_v33, %v378_v32 }
 0x256   : > { %v493_v22 = vadd.f32 %v488_v19, %v387_v20  ;;  %v1905_v23 = vadd.f32 %v651_v21, %v552_v18  ;;  %v489_v39 = vsel %vm433_vm5, %v1437_v30, %v488_v19  ;;  %v399_v21 = vld [vmem:[#allocation2 + $0x38] ss:$0 sm:$0xff] }
 0x257   : > { %v492_v42 = vadd.f32 %v489_v39, %v386_v38 }
 0x258   : > { %454 = vrot.lane.b32.xlu0 %v377_v25, %s1626_s18  ;;  %615 = vrot.lane.b32.xlu1 %v493_v22, %s1627_s20  ;;  %v369_v22 = vld [vmem:[#allocation2 + $0x9] ss:$0 sm:$0xff]  ;;  %v375_v25 = vld [vmem:[#allocation2 + $0xc] ss:$0 sm:$0xff] }
 0x259   : > { %v499_v27 = vpop.permute.xlu0 %498  ;;  %v666_v28 = vpop.permute.xlu1 %665 }
 0x25a   : > { %v500_v54 = vsel %vm433_vm5, %v1441_v46, %v499_v27  ;;  %v504_v62 = vadd.f32 %v499_v27, %v391_v60  ;;  %v668_v6 = vadd.f32 %v666_v28, %v582_v5 }
 0x25b   : > { %v503_v59 = vadd.f32 %v500_v54, %v390_v53  ;;  %v382_v53 = vld [vmem:[#allocation2 + $0x18] ss:$0 sm:$0xff] }
 0x25c   : > { %476 = vrot.lane.b32.xlu0 %v385_v31, %s1626_s18  ;;  %637 = vrot.lane.b32.xlu1 %v537_v29, %s1627_s20  ;;  %v632_v3 = vadd.f32 %v1902_v15, %v504_v62  ;;  %v374_v29 = vld [vmem:[#allocation2 + $0x4] ss:$0 sm:$0xff] }
 0x25d   : > { %v540_v34 = vpop.permute.xlu0 %539  ;;  %v1912_v35 = vpop.permute.xlu1 %443 }
 0x25e   : > { %v542_v52 = vadd.f32 %v540_v34, %v406_v51  ;;  %v449_v28 = vadd.f32 %v1912_v35, %v371_v24  ;;  %v383_v51 = vld [vmem:[#allocation2 + $0x20] ss:$0 sm:$0xff] }
 0x260   : > { %602 = vrot.lane.b32.xlu0 %v470_v36, %s1627_s20 }
 0x261   : > { %v575_v40 = vpop.permute.xlu0 %574  ;;  %v1917_v41 = vpop.permute.xlu1 %1449 }
 0x262   : > { %v1452_v43 = vunpack.i.h.bf16 %v1917_v41  ;;  %v577_v63 = vadd.f32 %v575_v40, %v420_v61  ;;  %v398_v40 = vld [vmem:[#allocation2 + $0x30] ss:$0 sm:$0xff]  ;;  %v1451_v45 = vunpack.i.l.bf16 %v1917_v41 }
 0x264   : > { %613 = vrot.lane.b32.xlu0 %v492_v42, %s1627_s20 }
 0x265   : > { %v625_v47 = vpop.permute.xlu0 %624  ;;  %v521_v48 = vpop.permute.xlu1 %520 }
 0x266   : > { %v1924_v50 = vsel %vm433_vm5, %v1452_v43, %v521_v48  ;;  %v628_v57 = vsel %vm594_vm6, %v625_v47, %v1902_v15  ;;  %v370_v15 = vld [vmem:[#allocation2 + $0x2] ss:$0 sm:$0xff] }
 0x267   : > { %v631_v2 = vadd.f32 %v628_v57, %v503_v59 }
 0x268   : > { %635 = vrot.lane.b32.xlu0 %v536_v49, %s1627_s20 }
 0x269   : > { %v646_v55 = vpop.permute.xlu0 %645  ;;  %v605_v12 = vpop.permute.xlu1 %604 }
 0x26a   : > { %v648_v56 = vadd.f32 %v646_v55, %v542_v52  ;;  %v418_v52 = vld [vmem:[#allocation2 + $0x68] ss:$0 sm:$0xff] }
 0x26c   : > { %569 = vrot.lane.b32.xlu0 %v419_v58, %s1626_s18  ;;  %693 = vrot.lane.b32.xlu1 %v648_v56, %s1628_s7 }
 0x270   : > { %660 = vrot.lane.b32.xlu0 %v577_v63, %s1627_s20  ;;  %683 = vrot.lane.b32.xlu1 %v631_v2, %s1628_s7 }
 0x274   : > { %685 = vrot.lane.b32.xlu0 %v632_v3, %s1628_s7 }
 0x278   : > { %704 = vrot.lane.b32.xlu0 %v668_v6, %s1628_s7 }
 0x27c   : > { %429 = vrot.lane.b32.xlu0 %v368_v7, %s1626_s18 }
 0x2c2   : > { %v700_v10 = vpop.permute.xlu0 %699 }
 0x2c3   : > { %v702_v11 = vadd.f32 %v700_v10, %v1905_v23  ;;  %v526_v23 = vadd.f32 %v521_v48, %v399_v21  ;;  %v367_v21 = vld [vmem:[#allocation2 + $0x8] ss:$0 sm:$0xff] }
 0x2c5   : > { %721 = vrot.lane.b32.xlu1 %v702_v11, %s1629_s8 }
 0x2c6   : > { %v1445_v13 = vpop.permute.xlu0 %1444 }
 0x2c7   : > { %v1446_v14 = vunpack.i.l.bf16 %v1445_v13  ;;  %v1447_v20 = vunpack.i.h.bf16 %v1445_v13 }
 0x2c9   : > { %727 = vrot.lane.b32.xlu1 %v426_v16, %s1629_s8  ;;  %v445_v8 = vsel %vm433_vm5, %v1446_v14, %v1912_v35  ;;  %v525_v35 = vadd.f32 %v1924_v50, %v398_v40 }
 0x2ca   : > { %v455_v17 = vpop.permute.xlu0 %454  ;;  %v616_v18 = vpop.permute.xlu1 %615  ;;  %v448_v19 = vadd.f32 %v445_v8, %v370_v15 }
 0x2cb   : > { %v456_v30 = vsel %vm433_vm5, %v1447_v20, %v455_v17  ;;  %v460_v31 = vadd.f32 %v455_v17, %v375_v25 }
 0x2cc   : > { %590 = vrot.lane.b32.xlu0 %v448_v19, %s1627_s20  ;;  %v459_v33 = vadd.f32 %v456_v30, %v374_v29 }
 0x2cd   : > { %431 = vrot.lane.b32.xlu1 %v369_v22, %s1626_s18  ;;  %v610_v36 = vadd.f32 %v605_v12, %v460_v31  ;;  %s1995_s18 = sld [smem:[#allocation10 + $0x1d]] }
 0x2ce   : > { %v477_v26 = vpop.permute.xlu0 %476  ;;  %v638_v27 = vpop.permute.xlu1 %637 }
 0x2cf   : > { %v643_v32 = vadd.f32 %v638_v27, %v526_v23  ;;  %v478_v54 = vsel %vm433_vm5, %v1451_v45, %v477_v26  ;;  %v482_v55 = vadd.f32 %v477_v26, %v383_v51 }
 0x2d0   : > { %v481_v59 = vadd.f32 %v478_v54, %v382_v53 }
 0x2d1   : > { %592 = vrot.lane.b32.xlu1 %v449_v28, %s1627_s20  ;;  %v621_v60 = vadd.f32 %v616_v18, %v482_v55  ;;  %s1997_s20 = sld [smem:[#allocation10 + $0x1e]] }
 0x2d2   : > { %v603_v34 = vpop.permute.xlu0 %602 }
 0x2d3   : > { %v606_v37 = vsel %vm594_vm6, %v603_v34, %v605_v12 }
 0x2d4   : > { %v609_v38 = vadd.f32 %v606_v37, %v459_v33 }
 0x2d5   : > { %673 = vrot.lane.b32.xlu1 %v610_v36, %s1628_s7 }
 0x2d6   : > { %v614_v39 = vpop.permute.xlu0 %613  ;;  %671 = vrot.lane.b32.xlu0 %v609_v38, %s1628_s7  ;;  %s1999_s7 = sld [smem:[#allocation10 + $0x1f]] }
 0x2d7   : > { %v617_v50 = vsel %vm594_vm6, %v614_v39, %v616_v18  ;;  %v366_v18 = vld [vmem:[#allocation2] ss:$0 sm:$0xff] }
 0x2d8   : > { %v620_v61 = vadd.f32 %v617_v50, %v481_v59 }
 0x2da   : > { %v636_v42 = vpop.permute.xlu0 %635 }
 0x2db   : > { %v639_v43 = vsel %vm594_vm6, %v636_v42, %v638_v27 }
 0x2dc   : > { %v642_v44 = vadd.f32 %v639_v43, %v525_v35 }
 0x2de   : > { %v570_v46 = vpop.permute.xlu0 %569  ;;  %v694_v47 = vpop.permute.xlu1 %693 }
 0x2df   : > { %v696_v48 = vadd.f32 %v694_v47, %v642_v44  ;;  %v697_v49 = vadd.f32 %v694_v47, %v643_v32  ;;  %v572_v56 = vadd.f32 %v570_v46, %v418_v52 }
 0x2e2   : > { %v661_v57 = vpop.permute.xlu0 %660  ;;  %v684_v41 = vpop.permute.xlu1 %683 }
 0x2e3   : > { %v663_v58 = vadd.f32 %v661_v57, %v572_v56 }
 0x2e6   : > { %v686_v62 = vpop.permute.xlu0 %685 }
 0x2e7   : > { %v687_v63 = vsel %vm675_vm7, %v684_v41, %v686_v62  ;;  %v691_v2 = vadd.f32 %v686_v62, %v621_v60  ;;  %v1633_v41 = vmov 0   ;;  %v966_v62 = vstv %s1993_s4  ;;  %s2449_s4 = sld [smem:[#allocation28_spill]] }
 0x2e8   : > { %v690_v3 = vadd.f32 %v687_v63, %v620_v61  ;;  %1454 = vset.pattern.permute.xlu1 %v1633_v41  ;;  %1453 = vset.pattern.permute.xlu0 %v1633_v41  ;;  %v2029_v63 = vld [vmem:[#allocation3 + $0x29] sm:$0xff]  ;;  %v1019_v41 = vld [vmem:[#allocation3 + $0x31] sm:$0xff] }
 0x2e9   : > { %712 = vrot.lane.b32.xlu1 %v691_v2, %s1629_s8  ;;  %v972_v2 = vstv %s1995_s18  ;;  %s1634_s18 = smov [#allocation11]  }
 0x2ea   : > { %710 = vrot.lane.b32.xlu0 %v690_v3, %s1629_s8  ;;  %v705_v4 = vpop.permute.xlu0 %704  ;;  %s2001_s8 = sld [smem:[#allocation10 + $0x20]]  ;;  %v924_v3 = vstv %s1981_s10 }
 0x2eb   : > { %v707_v10 = vadd.f32 %v705_v4, %v663_v58  ;;  %v930_v4 = vstv %s1983_s11 }
 0x2ee   : > { %v430_v14 = vpop.permute.xlu0 %429 }
 0x337   : > { %v722_v5 = vpop.permute.xlu1 %721 }
 0x338   : > { %v724_v6 = vadd.f32 %v722_v5, %v696_v48  ;;  %v725_v7 = vadd.f32 %v722_v5, %v697_v49  ;;  %v761_v49 = vlaneseq  ;;  %v2038_v5 = vld [vmem:[#allocation3 + $0x2a] sm:$0xff] }
 0x33a   : > { %733 = vrot.lane.b32.xlu0 %v724_v6, %s1630_s26  ;;  %735 = vrot.lane.b32.xlu1 %v725_v7, %s1630_s26  ;;  %v762_v51 = vshrl.u32 %v761_v49, 7  ;;  %s2003_s26 = sld [smem:[#allocation10 + $0x4]]  ;;  %v978_v6 = vstv %s1997_s20  ;;  %v2041_v7 = vld [vmem:[#allocation3 + $0x2b] sm:$0xff]  ;;  %s1548_s20 = sshll.u32 %s1634_s18, 4  ;;  %s1549_s20 = int_to_ptr.vmem [resolvable:$false] %s1548_s20 }
 0x33b   : > { %v728_v11 = vpop.permute.xlu1 %727  ;;  %v802_v49 = vld [vmem:[#allocation3 + $0x5] sm:$0xff] }
 0x33c   : > { %v730_v12 = vadd.f32 %v728_v11, %v707_v10  ;;  %v763_v52 = vsub.s32 0, %v762_v51  ;;  %v984_v10 = vstv %s1999_s7  ;;  %v936_v11 = vstv %s1985_s9  ;;  %s2469_s9 = sld [smem:[#allocation37_spill]]  ;;  %s1550_s7 = scalar_lea.vmem %s1549_s20, 512 }
 0x33d   : > { %v804_v51 = vstv %s2032_s15  ;;  %s2129_s15 = sld [smem:[#allocation10 + $0xc]] }
 0x33e   : > { %744 = vrot.lane.b32.xlu0 %v730_v12, %s1631_s27  ;;  %v591_v16 = vpop.permute.xlu0 %590  ;;  %s2005_s27 = sld [smem:[#allocation10 + $0x21]]  ;;  %v942_v12 = vstv %s1987_s17 }
 0x33f   : > { %v432_v13 = vpop.permute.xlu1 %431 }
 0x340   : > { %v434_v19 = vsel %vm433_vm5, %v430_v14, %v432_v13  ;;  %v438_v25 = vadd.f32 %v432_v13, %v367_v21  ;;  %v948_v13 = vstv %s1989_s21  ;;  %v2049_v14 = vld [vmem:[#allocation3 + $0x2c] sm:$0xff] }
 0x341   : > { %v437_v22 = vadd.f32 %v434_v19, %v366_v18  ;;  %v2063_v19 = vmul.f32 %v972_v2, %v2029_v63 }
 0x343   : > { %v593_v15 = vpop.permute.xlu1 %592 }
 0x344   : > { %v595_v20 = vsel %vm594_vm6, %v591_v16, %v593_v15  ;;  %v599_v28 = vadd.f32 %v593_v15, %v438_v25  ;;  %v995_v15 = vld [vmem:[#allocation3 + $0x2d] sm:$0xff]  ;;  %v996_v25 = vstv %s2005_s27 }
 0x345   : > { %v598_v27 = vadd.f32 %v595_v20, %v437_v22  ;;  %v820_v16 = vld [vmem:[#allocation3 + $0x8] sm:$0xff]  ;;  %v2073_v22 = vmul.f32 %v978_v6, %v2038_v5 }
 0x346   : > { %v826_v20 = vld [vmem:[#allocation3 + $0x9] sm:$0xff] }
 0x347   : > { %v674_v8 = vpop.permute.xlu1 %673 }
 0x348   : > { %v672_v17 = vpop.permute.xlu0 %671  ;;  %v680_v31 = vadd.f32 %v674_v8, %v599_v28  ;;  %v2093_v28 = vmul.f32 %v996_v25, %v995_v15  ;;  %v1025_v15 = vld [vmem:[#allocation3 + $0x32] sm:$0xff] }
 0x349   : > { %v676_v26 = vsel %vm675_vm7, %v672_v17, %v674_v8  ;;  %v822_v8 = vstv %s2003_s26  ;;  %v2407_v17 = vstv %s1991_s25 }
 0x34a   : > { %v679_v30 = vadd.f32 %v676_v26, %v598_v27  ;;  %v1001_v26 = vld [vmem:[#allocation3 + $0x2e] sm:$0xff] }
 0x35b   : > { %v713_v23 = vpop.permute.xlu1 %712 }
 0x35c   : > { %v711_v24 = vpop.permute.xlu0 %710  ;;  %v719_v36 = vadd.f32 %v713_v23, %v680_v31  ;;  %v823_v31 = vmul.f32 %v822_v8, %v820_v16  ;;  %v1031_v16 = vld [vmem:[#allocation3 + $0x33] sm:$0xff] }
 0x35d   : > { %v715_v29 = vsel %vm714_vm8, %v711_v24, %v713_v23  ;;  %v2078_v23 = vmul.f32 %v984_v10, %v2041_v7  ;;  %v990_v24 = vstv %s2001_s8 }
 0x35e   : > { %v718_v32 = vadd.f32 %v715_v29, %v679_v30  ;;  %v2089_v27 = vmul.f32 %v990_v24, %v2049_v14  ;;  %v2405_v29 = vstv %s2009_s22  ;;  %v1007_v30 = vld [vmem:[#allocation3 + $0x2f] sm:$0xff] }
 0x3ac   : > { %v734_v33 = vpop.permute.xlu0 %733  ;;  %v736_v34 = vpop.permute.xlu1 %735 }
 0x3ad   : > { %v738_v37 = vsel %vm737_vm9, %v734_v33, %v736_v34  ;;  %v742_v39 = vadd.f32 %v736_v34, %v719_v36  ;;  %v832_v33 = vld [vmem:[#allocation3 + $0xa] sm:$0xff]  ;;  %v2400_v34 = vstv %s2013_s1 }
 0x3ae   : > { %v741_v38 = vadd.f32 %v738_v37, %v718_v32  ;;  %v838_v36 = vld [vmem:[#allocation3 + $0xb] sm:$0xff]  ;;  %v2397_v37 = vstv %s2015_s2 }
 0x3b0   : > { %v745_v40 = vpop.permute.xlu0 %744 }
 0x3b1   : > { %v747_v35 = vadd.f32 %v745_v40, %v741_v38  ;;  %v748_v42 = vadd.f32 %v745_v40, %v742_v39  ;;  %v844_v38 = vld [vmem:[#allocation3 + $0xc] sm:$0xff]  ;;  %v2396_v39 = vstv %s2017_s23  ;;  %v2105_v40 = vmul.f32 %v2405_v29, %v1001_v26 }
 0x3b3   : > { %v1275_v43 = vmul.f32 -1.442695, %v747_v35  ;;  %v1276_v44 = vmul.f32 -1.442695, %v748_v42  ;;  %v2403_v35 = vstv %s2011_s0  ;;  %v850_v42 = vld [vmem:[#allocation3 + $0xd] sm:$0xff] }
 0x3b5   : > { %1455 = vpow2.f32 %v1275_v43  ;;  %v2395_v43 = vstv %s2019_s14  ;;  %s2145_s14 = sld [smem:[#allocation10 + $0x10]] }
 0x3b6   : > { %1457 = vpow2.f32 %v1276_v44  ;;  %v856_v44 = vld [vmem:[#allocation3 + $0xe] sm:$0xff] }
 0x3bf   : > { %v1456_v45 = vpop.eup %1455 }
 0x3c0   : > { %v1458_v46 = vpop.eup %1457  ;;  %v755_v47 = vadd.f32 1.0, %v1456_v45  ;;  %v2398_v45 = vstv %s2021_s13  ;;  %s2141_s13 = sld [smem:[#allocation10 + $0xf]] }
 0x3c1   : > { %v756_v48 = vadd.f32 1.0, %v1458_v46  ;;  %v1010_v46 = vmul.f32 %v2403_v35, %v1007_v30  ;;  %v805_v30 = vmul.f32 %v804_v51, %v802_v49  ;;  %v821_v35 = vld [vmem:[#allocation3 + $0x10] sm:$0xff] }
 0x3c2   : > { %1459 = vrcp.f32 %v755_v47  ;;  %v796_v47 = vld [vmem:[#allocation3 + $0x4] sm:$0xff] }
 0x3c3   : > { %1461 = vrcp.f32 %v756_v48  ;;  %v798_v48 = vstv %s2023_s24  ;;  %s2139_s24 = sld [smem:[#allocation10 + $0xe]]  ;;  %v1076_v29 = vadd.f32 %v1010_v46, %v2105_v40 }
 0x3c4   : > { %v799_v26 = vmul.f32 %v798_v48, %v796_v47 }
 0x3cc   : > { %v1460_v53 = vpop.eup %1459 }
 0x3cd   : > { %v1462_v54 = vpop.eup %1461  ;;  %v764_v55 = vrot.slane %v1460_v53, %v763_v52  ;;  %v810_v53 = vstv %s2034_s19  ;;  %s2137_s19 = sld [smem:[#allocation10 + $0x28]] }
 0x3ce   : > { %v768_v56 = vrot.slane %v1462_v54, %v763_v52  ;;  %v808_v52 = vld [vmem:[#allocation3 + $0x6] sm:$0xff]  ;;  %v835_v54 = vmul.f32 %v2400_v34, %v832_v33 }
 0x3cf   : > { %771 = vrot.lane.b32.xlu1 %v764_v55, %s1632_s29  ;;  %v841_v55 = vmul.f32 %v2397_v37, %v838_v36  ;;  %v811_v33 = vmul.f32 %v810_v53, %v808_v52  ;;  %v1014_v36 = vstv %s2066_s6  ;;  %v1026_v37 = vstv %s2082_s16  ;;  %s2147_s6 = sld [smem:[#allocation10 + $0x11]]  ;;  %s2150_s16 = sld [smem:[#allocation10 + $0x12]] }
 0x3d0   : > { %773 = vrot.lane.b32.xlu0 %v768_v56, %s1632_s29  ;;  %s2007_s29 = sld [smem:[#allocation10 + $0x5]]  ;;  %v847_v56 = vmul.f32 %v2396_v39, %v844_v38  ;;  %v1020_v39 = vstv %s2068_s28  ;;  %v1028_v34 = vmul.f32 %v1026_v37, %v1025_v15 }
 0x3d1   : > { %v1047_v52 = vadd.f32 %v841_v55, %v835_v54  ;;  %v806_v54 = vmul.f32 %v850_v42, %v804_v51  ;;  %v812_v55 = vmul.f32 %v856_v44, %v810_v53 }
 0x3d6   : > { %2439 = sst [smem:[#allocation27_spill]] %s2007_s29  ;;  %v2402_v21 = vstv %s2007_s29 }
 0x3d7   : > { %v829_v32 = vmul.f32 %v2402_v21, %v826_v20  ;;  %s2122_s29 = sld [smem:[#allocation10 + $0x1b]]  ;;  %v862_v20 = vld [vmem:[#allocation3 + $0xf] sm:$0xff]  ;;  %v800_v21 = vmul.f32 %v844_v38, %v798_v48 }
 0x3d8   : > { %s2448_s28 = sld [smem:[#allocation27_spill]] }
 0x441   : > { %v772_v57 = vpop.permute.xlu1 %771 }
 0x442   : > { %v774_v50 = vpop.permute.xlu0 %773 }
 0x443   : > { %v776_v58 = vsel %vm775_vm11, %v772_v57, %v774_v50  ;;  %v814_v57 = vld [vmem:[#allocation3 + $0x7] sm:$0xff]  ;;  %v816_v50 = vstv %s2044_s12  ;;  %s2132_s12 = sld [smem:[#allocation10 + $0xd]] }
 0x444   : > { %v779_v59 = vmul.f32 %v776_v58, %v1845_v1  ;;  %v778_v60 = vmul.f32 %v776_v58, %v1842_v0  ;;  %v918_v0 = vstv %s1979_s5  ;;  %v2026_v1 = vld [vmem:[#allocation3 + $0x28] sm:$0xff]  ;;  %v1013_v58 = vld [vmem:[#allocation3 + $0x30] sm:$0xff] }
 0x445   : > { %v2058_v18 = vmul.f32 %v966_v62, %v2026_v1 }
 0x446   : > { %v783_v61 = vsel %vm346_vm2, %v779_v59, 0.0  ;;  %v780_v9 = vsel %vm346_vm2, %v778_v60, 0.0  ;;  %v853_v59 = vmul.f32 %v2395_v43, %v850_v42  ;;  %v859_v60 = vmul.f32 %v2398_v45, %v856_v44 }
 0x447   : > { %784 = vadd.xlane.f32.xlu0 %v783_v61  ;;  %781 = vadd.xlane.f32.xlu1 %v780_v9  ;;  %v2404_v61 = vstv %s2052_s3  ;;  %v1045_v9 = vadd.f32 %v829_v32, %v823_v31  ;;  %v817_v43 = vmul.f32 %v816_v50, %v814_v57  ;;  %v1032_v45 = vstv %s2084_s30  ;;  %s2152_s30 = sld [smem:[#allocation10 + $0x13]] }
 0x448   : > { %v1016_v31 = vmul.f32 %v1014_v36, %v1013_v58  ;;  %v1022_v32 = vmul.f32 %v1020_v39, %v1019_v41  ;;  %v1034_v47 = vmul.f32 %v1032_v45, %v1031_v16  ;;  %v865_v49 = vmul.f32 %v2404_v61, %v862_v20 }
 0x449   : > { %v1015_v57 = vmul.f32 %v1014_v36, %v2026_v1  ;;  %v1021_v58 = vmul.f32 %v1020_v39, %v2029_v63  ;;  %v1027_v41 = vmul.f32 %v1026_v37, %v2038_v5  ;;  %v1033_v15 = vmul.f32 %v1032_v45, %v2041_v7 }
 0x44a   : > { %v1041_v16 = vadd.f32 %v805_v30, %v799_v26  ;;  %v1043_v61 = vadd.f32 %v817_v43, %v811_v33  ;;  %v818_v1 = vmul.f32 %v862_v20, %v816_v50  ;;  %v1074_v36 = vadd.f32 %v2093_v28, %v2089_v27  ;;  %v1037_v43 = vld [vmem:[#allocation3 + $0x34] sm:$0xff] }
 0x44b   : > { %v1078_v63 = vadd.f32 %v1022_v32, %v1016_v31  ;;  %v1080_v39 = vadd.f32 %v1034_v47, %v1028_v34  ;;  %v2406_v5 = vstv %s2122_s29  ;;  %v1070_v7 = vadd.f32 %v2063_v19, %v2058_v18 }
 0x44c   : > { %v1072_v37 = vadd.f32 %v2078_v23, %v2073_v22  ;;  %v2168_v42 = vmul.f32 %v822_v8, %v821_v35  ;;  %v870_v27 = vstv %s2129_s15  ;;  %v1049_v28 = vadd.f32 %v853_v59, %v847_v56 }
 0x44d   : > { %v1051_v34 = vadd.f32 %v865_v49, %v859_v60  ;;  %v1083_v18 = vadd.f32 %v1047_v52, %v1045_v9  ;;  %v1038_v19 = vstv %s2137_s19  ;;  %v1077_v22 = vadd.f32 %v1021_v58, %v1015_v57 }
 0x44e   : > { %v1079_v23 = vadd.f32 %v1033_v15, %v1027_v41  ;;  %v1081_v40 = vadd.f32 %v1043_v61, %v1041_v16  ;;  %v1042_v8 = vadd.f32 %v806_v54, %v800_v21  ;;  %v1044_v44 = vadd.f32 %v818_v1, %v812_v55 }
 0x44f   : > { %v1098_v45 = vadd.f32 %v1076_v29, %v1074_v36  ;;  %v1100_v46 = vadd.f32 %v1080_v39, %v1078_v63  ;;  %v2175_v51 = vmul.f32 %v870_v27, %v821_v35  ;;  %v876_v53 = vstv %s2132_s12 }
 0x450   : > { %v882_v56 = vstv %s2139_s24  ;;  %v888_v50 = vstv %s2141_s13  ;;  %v894_v59 = vstv %s2145_s14  ;;  %v900_v60 = vstv %s2147_s6 }
 0x451   : > { %v906_v9 = vstv %s2150_s16  ;;  %v912_v20 = vstv %s2152_s30  ;;  %v2185_v61 = vmul.f32 %v1038_v19, %v2049_v14  ;;  %v2187_v21 = vadd.f32 %v1051_v34, %v1049_v28 }
 0x452   : > { %v2189_v29 = vadd.f32 %v1079_v23, %v1077_v22  ;;  %v2191_v35 = vmul.f32 %v1038_v19, %v1037_v43  ;;  %v2193_v31 = vadd.f32 %v1083_v18, %v1081_v40  ;;  %v2195_v32 = vadd.f32 %v1044_v44, %v1042_v8 }
 0x453   : > { %2442 = vst [vmem:[#allocation30_spill] sm:$0xff] %v2185_v61  ;;  %v2197_v14 = vadd.f32 %v1072_v37, %v1070_v7  ;;  %v2199_v47 = vadd.f32 %v1100_v46, %v1098_v45  ;;  %v2446_v19 = vstv %s2009_s22  ;;  %v2447_v23 = vstv %s2011_s0  ;;  %s2450_s22 = sld [smem:[#allocation29_spill]]  ;;  %s2464_s0 = sld [smem:[#allocation25_spill]] }
 0x454   : > { %2443 = vst [vmem:[#allocation31_spill] sm:$0xff] %v2191_v35  ;;  %v2459_v35 = vstv %s2122_s29 }
 0x455   : > { %2444 = vst [vmem:[#allocation32_spill] sm:$0xff] %v2197_v14  ;;  %2445 = vst [vmem:[#allocation33_spill] sm:$0xff] %v2199_v47  ;;  %v2458_v47 = vstv %s1991_s25 }
 0x459   : > { %s1148_s21 = scalar_lea.sflag [#allocation6], %s2464_s0 }
 0x4d4   : > { %v785_v38 = vpop.xlane.xlu0 %784  ;;  %v782_v48 = vpop.xlane.xlu1 %781 }
 0x4d5   : > { %794 = vst.msk [vmem:[#allocation3 + $0x20] sm:$0xff] %vm786_vm10, %v785_v38  ;;  %793 = vst.msk [vmem:[#allocation3 + $0x18] sm:$0xff] %vm786_vm10, %v782_v48 }
 0x4dc   : > { %v917_v26 = vld [vmem:[#allocation3 + $0x20] sm:$0xff]  ;;  %v833_v28 = vld [vmem:[#allocation3 + $0x12] sm:$0xff] }
 0x4dd   : > { %v923_v30 = vld [vmem:[#allocation3 + $0x21] sm:$0xff]  ;;  %v920_v49 = vmul.f32 %v918_v0, %v917_v26  ;;  %v967_v16 = vmul.f32 %v966_v62, %v917_v26  ;;  %v827_v62 = vld [vmem:[#allocation3 + $0x11] sm:$0xff] }
 0x4de   : > { %v929_v33 = vld [vmem:[#allocation3 + $0x22] sm:$0xff]  ;;  %v926_v52 = vmul.f32 %v924_v3, %v923_v30  ;;  %v973_v36 = vmul.f32 %v972_v2, %v923_v30  ;;  %v839_v43 = vld [vmem:[#allocation3 + $0x13] sm:$0xff] }
 0x4df   : > { %v932_v57 = vmul.f32 %v930_v4, %v929_v33  ;;  %v935_v58 = vld [vmem:[#allocation3 + $0x23] sm:$0xff]  ;;  %v979_v7 = vmul.f32 %v978_v6, %v929_v33  ;;  %v845_v2 = vld [vmem:[#allocation3 + $0x14] sm:$0xff] }
 0x4e0   : > { %v941_v41 = vld [vmem:[#allocation3 + $0x24] sm:$0xff]  ;;  %v938_v54 = vmul.f32 %v936_v11, %v935_v58  ;;  %v985_v37 = vmul.f32 %v984_v10, %v935_v58  ;;  %v851_v8 = vld [vmem:[#allocation3 + $0x15] sm:$0xff]  ;;  %v2233_v44 = vadd.f32 %v926_v52, %v920_v49  ;;  %v1069_v26 = vadd.f32 %v973_v36, %v967_v16 }
 0x4e1   : > { %v947_v15 = vld [vmem:[#allocation3 + $0x25] sm:$0xff]  ;;  %v944_v55 = vmul.f32 %v942_v12, %v941_v41  ;;  %v991_v34 = vmul.f32 %v990_v24, %v941_v41  ;;  %v863_v45 = vld [vmem:[#allocation3 + $0x17] sm:$0xff]  ;;  %v2451_v58 = vstv %s2448_s28 }
 0x4e2   : > { %v950_v1 = vmul.f32 %v948_v13, %v947_v15  ;;  %v953_v38 = vld [vmem:[#allocation3 + $0x26] sm:$0xff]  ;;  %v997_v18 = vmul.f32 %v996_v25, %v947_v15  ;;  %v2235_v6 = vadd.f32 %v938_v54, %v932_v57  ;;  %v857_v25 = vld [vmem:[#allocation3 + $0x16] sm:$0xff]  ;;  %v1071_v30 = vadd.f32 %v985_v37, %v979_v7 }
 0x4e3   : > { %v959_v48 = vld [vmem:[#allocation3 + $0x27] sm:$0xff]  ;;  %v956_v63 = vmul.f32 %v2407_v17, %v953_v38  ;;  %v1003_v22 = vmul.f32 %v2446_v19, %v953_v38  ;;  %v869_v46 = vld [vmem:[#allocation3 + $0x18] sm:$0xff]  ;;  %v830_v41 = vmul.f32 %v2451_v58, %v827_v62  ;;  %v2452_v15 = vstv %s2013_s1  ;;  %s2465_s1 = sld [smem:[#allocation20_spill]] }
 0x4e4   : > { %v962_v39 = vmul.f32 %v2406_v5, %v959_v48  ;;  %v1009_v40 = vmul.f32 %v2447_v23, %v959_v48  ;;  %v2237_v10 = vadd.f32 %v950_v1, %v944_v55  ;;  %v1073_v33 = vadd.f32 %v997_v18, %v991_v34  ;;  %v875_v52 = vld [vmem:[#allocation3 + $0x19] sm:$0xff] }
 0x4e5   : > { %v881_v57 = vld [vmem:[#allocation3 + $0x1a] sm:$0xff]  ;;  %v836_v54 = vmul.f32 %v2452_v15, %v833_v28  ;;  %v2453_v55 = vstv %s2015_s2  ;;  %v2454_v38 = vstv %s2017_s23  ;;  %v2456_v7 = vstv %s2450_s22  ;;  %s2466_s2 = sld [smem:[#allocation26_spill]] }
 0x4e6   : > { %v2239_v24 = vadd.f32 %v962_v39, %v956_v63  ;;  %v1075_v49 = vadd.f32 %v1009_v40, %v1003_v22  ;;  %v842_v1 = vmul.f32 %v2453_v55, %v839_v43  ;;  %v848_v48 = vmul.f32 %v2454_v38, %v845_v2  ;;  %v887_v16 = vld [vmem:[#allocation3 + $0x1b] sm:$0xff] }
 0x4e7   : > { %v893_v36 = vld [vmem:[#allocation3 + $0x1c] sm:$0xff]  ;;  %v2455_v63 = vstv %s2449_s4  ;;  %v860_v37 = vmul.f32 %v2456_v7, %v857_v25  ;;  %v2457_v34 = vstv %s2052_s3  ;;  %v872_v19 = vmul.f32 %v870_v27, %v869_v46  ;;  %s2467_s3 = sshll.u32 %s2464_s0, 4 }
 0x4e8   : > { %v854_v39 = vmul.f32 %v2455_v63, %v851_v8  ;;  %v866_v18 = vmul.f32 %v2457_v34, %v863_v45  ;;  %v899_v22 = vld [vmem:[#allocation3 + $0x1d] sm:$0xff]  ;;  %v877_v40 = vmul.f32 %v876_v53, %v827_v62  ;;  %v878_v58 = vmul.f32 %v876_v53, %v875_v52  ;;  %s215_s13 = scalar_lea.vmem [#allocation11], %s2467_s3 }
 0x4e9   : > { %v905_v23 = vld [vmem:[#allocation3 + $0x1e] sm:$0xff]  ;;  %v883_v15 = vmul.f32 %v882_v56, %v833_v28  ;;  %v884_v55 = vmul.f32 %v882_v56, %v881_v57  ;;  %v889_v27 = vmul.f32 %v888_v50, %v839_v43  ;;  %v890_v63 = vmul.f32 %v888_v50, %v887_v16  ;;  %s1161_s23 = sshll.u32 %s215_s13, 4  ;;  %s1325_s5 = sshll.u32 %s2465_s1, 8  ;;  %s2319_s23 = int_to_ptr.vmem [resolvable:$true] %s1161_s23 }
 0x4ea   : > { %v911_v38 = vld [vmem:[#allocation3 + $0x1f] sm:$0xff]  ;;  %v895_v62 = vmul.f32 %v894_v59, %v845_v2  ;;  %v896_v7 = vmul.f32 %v894_v59, %v893_v36  ;;  %v901_v53 = vmul.f32 %v900_v60, %v851_v8  ;;  %v902_v28 = vmul.f32 %v900_v60, %v899_v22  ;;  %s2324_s17 = scalar_lea.hbm %s2469_s9, %s1325_s5  ;;  %s1544_s25 = scalar_lea.vmem %s2319_s23, 256 }
 0x4eb   : > { %v907_v34 = vmul.f32 %v906_v9, %v857_v25  ;;  %v908_v56 = vmul.f32 %v906_v9, %v905_v23  ;;  %v913_v5 = vmul.f32 %v912_v20, %v863_v45  ;;  %v914_v43 = vmul.f32 %v912_v20, %v911_v38  ;;  %p1545_p3 = scmp.ne.s32.totalorder %s2319_s23, %s1544_s25  ;;  %p1551_p2 = scmp.lt.s32.totalorder %s2319_s23, %s1549_s20 }
 0x4ec   : > { %v919_v17 = vmul.f32 %v918_v0, %v869_v46  ;;  %v925_v50 = vmul.f32 %v924_v3, %v875_v52  ;;  %v931_v2 = vmul.f32 %v930_v4, %v881_v57  ;;  %v937_v59 = vmul.f32 %v936_v11, %v887_v16  ;;  %p1552_p6 = scmp.lt.s32.totalorder %s1550_s7, %s1544_s25 }
 0x4ed   : > { %v943_v8 = vmul.f32 %v942_v12, %v893_v36  ;;  %v949_v60 = vmul.f32 %v948_v13, %v899_v22  ;;  %v955_v25 = vmul.f32 %v2458_v47, %v905_v23  ;;  %v961_v9 = vmul.f32 %v2459_v35, %v911_v38  ;;  %p1546_p7 = pnand %p1545_p3, %p1769_p5 }
 0x4ee   : > { %v1046_v45 = vadd.f32 %v830_v41, %v2168_v42  ;;  %v1048_v61 = vadd.f32 %v842_v1, %v836_v54  ;;  %v1050_v20 = vadd.f32 %v854_v39, %v848_v48  ;;  %v1052_v14 = vadd.f32 %v866_v18, %v860_v37  ;;  %p1553_p8 = por %p1552_p6, %p1551_p2 }
 0x4ef   : > { %v1053_v0 = vadd.f32 %v877_v40, %v2175_v51  ;;  %v1054_v3 = vadd.f32 %v878_v58, %v872_v19  ;;  %v1055_v46 = vadd.f32 %v889_v27, %v883_v15  ;;  %v1056_v4 = vadd.f32 %v890_v63, %v884_v55  ;;  %v2461_v15 = vld [vmem:[#allocation30_spill] sm:$0xff]  ;;  %v2462_v27 = vld [vmem:[#allocation31_spill] sm:$0xff]  ;;  %p1547_p9 = pneg %p1546_p7 }
 0x4f0   : > { %v1057_v52 = vadd.f32 %v901_v53, %v895_v62  ;;  %v1058_v11 = vadd.f32 %v902_v28, %v896_v7  ;;  %v1059_v57 = vadd.f32 %v913_v5, %v907_v34  ;;  %v1060_v12 = vadd.f32 %v914_v43, %v908_v56 }
 0x4f1   : > { %v1061_v16 = vadd.f32 %v925_v50, %v919_v17  ;;  %v1063_v13 = vadd.f32 %v937_v59, %v931_v2  ;;  %v1065_v36 = vadd.f32 %v949_v60, %v943_v8  ;;  %v1067_v47 = vadd.f32 %v961_v9, %v955_v25  ;;  %v1471_v50 = vld [vmem:[%s2466_s2] sm:$0xff]  ;;  %v1472_v8 = vld [vmem:[%s2466_s2 + $0x8] sm:$0xff]  ;;  %p1554_p10 = pnand %p1553_p8, %p1547_p9 }
 0x4f2   : > { %v1087_v22 = vadd.f32 %v1055_v46, %v1053_v0  ;;  %v1095_v35 = vadd.f32 %v1071_v30, %v1069_v26  ;;  %v1089_v23 = vadd.f32 %v1059_v57, %v1057_v52  ;;  %v1097_v41 = vadd.f32 %v1075_v49, %v1073_v33 }
 0x4f3   : > { %v1091_v42 = vadd.f32 %v1063_v13, %v1061_v16  ;;  %v1084_v54 = vadd.f32 %v1048_v61, %v1046_v45  ;;  %v1093_v1 = vadd.f32 %v1067_v47, %v1065_v36  ;;  %v1086_v48 = vadd.f32 %v1052_v14, %v1050_v20  ;;  %v2460_v14 = vld [vmem:[#allocation32_spill] sm:$0xff] }
 0x4f4   : > { %v1103_v51 = vadd.f32 %v1087_v22, %v2187_v21  ;;  %v1088_v39 = vadd.f32 %v1056_v4, %v1054_v3  ;;  %v1109_v18 = vadd.f32 %v2189_v29, %v1097_v41  ;;  %v1090_v5 = vadd.f32 %v1060_v12, %v1058_v11 }
 0x4f5   : > { %v1105_v37 = vadd.f32 %v1091_v42, %v1089_v23  ;;  %v1092_v17 = vadd.f32 %v2235_v6, %v2233_v44  ;;  %v1107_v19 = vadd.f32 %v1095_v35, %v1093_v1  ;;  %v1094_v26 = vadd.f32 %v2239_v24, %v2237_v10  ;;  %v2463_v44 = vld [vmem:[#allocation33_spill] sm:$0xff] }
 0x4f6   : > { %v1111_v40 = vadd.f32 %v1103_v51, %v2193_v31  ;;  %v1102_v61 = vadd.f32 %v1084_v54, %v2195_v32  ;;  %v1104_v30 = vadd.f32 %v1088_v39, %v1086_v48  ;;  %v1115_v29 = vadd.f32 %v1109_v18, %v2461_v15 }
 0x4f7   : > { %v1106_v33 = vadd.f32 %v1092_v17, %v1090_v5  ;;  %v1113_v21 = vadd.f32 %v1107_v19, %v1105_v37  ;;  %v1108_v49 = vadd.f32 %v2460_v14, %v1094_v26  ;;  %v1116_v6 = vadd.f32 %v2463_v44, %v2462_v27 }
 0x4f8   : > { %v1112_v58 = vadd.f32 %v1104_v30, %v1102_v61 }
 0x4f9   : > { %v1117_v55 = vadd.f32 %v1113_v21, %v1111_v40  ;;  %v1114_v38 = vadd.f32 %v1108_v49, %v1106_v33 }
 0x4fb   : > { %v1119_v63 = vadd.f32 %v1117_v55, %v1115_v29  ;;  %v1118_v31 = vadd.f32 %v1114_v38, %v1112_v58 }
 0x4fd   : > { %v1317_v62 = vmul.f32 -1.442695, %v1119_v63  ;;  %v1120_v10 = vadd.f32 %v1118_v31, %v1116_v6 }
 0x4ff   : > { %1463 = vpow2.f32 %v1317_v62  ;;  %v1318_v32 = vmul.f32 -1.442695, %v1120_v10 }
 0x501   : > { %1465 = vpow2.f32 %v1318_v32 }
 0x509   : > { %v1464_v24 = vpop.eup %1463 }
 0x50a   : > { %v1127_v7 = vadd.f32 1.0, %v1464_v24 }
 0x50b   : > { %v1466_v53 = vpop.eup %1465 }
 0x50c   : > { %1467 = vrcp.f32 %v1127_v7  ;;  %v1128_v28 = vadd.f32 1.0, %v1466_v53 }
 0x50e   : > { %1469 = vrcp.f32 %v1128_v28 }
 0x516   : > { %v1468_v34 = vpop.eup %1467 }
 0x517   : > { %1135 = vperm.xlu0 %1453, %v1468_v34  }
 0x518   : > { %v1470_v56 = vpop.eup %1469 }
 0x519   : > { %1140 = vperm.xlu1 %1454, %v1470_v56  }
 0x596   : > { %v1136_v43 = vpop.permute.xlu0 %1135 }
 0x597   : > { %v1143_v2 = vmul.f32 %v1471_v50, %v1136_v43 }
 0x598   : > { %v1141_v59 = vpop.permute.xlu1 %1140 }
 0x599   : > { %1145 = vst.msk [vmem:[%s215_s13] sm:$0xff] %vm346_vm2, %v1143_v2  ;;  %v1144_v60 = vmul.f32 %v1472_v8, %v1141_v59 }
 0x59b   : > { %1146 = vst.msk [vmem:[%s215_s13 + $0x8] sm:$0xff] %vm346_vm2, %v1144_v60 }
 0x59c   : > { %1557 = shalt.err (!%p1554_p10)
}
 0x59d   : > { %s1558_s8 = scalar_lea.hbm %s2324_s17, 256  ;;  %s1562_s29 = scalar_lea.hbm %s2469_s9, 512 }
 0x59e   : > { %p1559_p1 = scmp.ne.s32.totalorder %s2324_s17, %s1558_s8  ;;  %p1563_p12 = scmp.lt.u32.totalorder %s2324_s17, %s2469_s9 }
 0x59f   : > { %p1564_p13 = scmp.lt.u32.totalorder %s1562_s29, %s1558_s8  ;;  %p1566_p3 = scmp.lt.u32.totalorder %s1558_s8, %s2324_s17 }
 0x5a0   : > { %p1560_p4 = pnand %p1559_p1, %p1769_p5 }
 0x5a1   : > { %p1565_p0 = por %p1564_p13, %p1563_p12 }
 0x5a2   : > { %p1561_p11 = pneg %p1560_p4 }
 0x5a3   : > { %p1567_p7 = por %p1566_p3, %p1565_p0 }
 0x5a5   : > { %p1568_p9 = pnand %p1567_p7, %p1561_p11 }
 0x5a7   : > { %1571 = shalt.err (!%p1568_p9)
}
 0x5a8   : > { %s1635_s19 = smov 128   ;;  %s1636_s24 = smov 8  }
 0x5a9   : > { %1363 = dma.vmem_to_hbm [thread:$0]  (%p1769_p5), %s2319_s23, 256, %s2324_s17, %s1148_s21, %s1635_s19, %s1635_s19, %s1636_s24  }
 0x5aa PF: > { %s2470_s6 = sld [smem:[#allocation16_spill]]  ;;  %s2471_s16 = sld [smem:[#allocation21_spill]] }
 0x5ab   : > { %s2472_s30 = sld [smem:[#allocation19_spill]] }
 0x5b0   : > { %s1176_s28 = sand.u32 1, %s2470_s6   ;;  %p2473_p2 = scmp.ne.s32.totalorder %s2471_s16, 0 }
 0x5b1   : > { %p2474_p6 = scmp.ge.s32.totalorder %s2472_s30, 2  ;;  %s1177_s4 = scalar_lea.sflag [#allocation6], %s1176_s28 }
 0x5b3   : > { %p1377_p8 = pnand %p2474_p6, %p2473_p2 }
 0x5b5   : > { %1601 = dma.done.wait (!%p1377_p8), %s1177_s4, 256  }
 0x5b6   : > { %1603 = vsyncadd (!%p1377_p8), %s1177_s4, 4294967040  ;;  %s2475_s15 = sld [smem:[#allocation22_spill]]  ;;  %s2476_s12 = sld [smem:[#allocation17_spill]] }
 0x5b7   : > { %s2477_s13 = sld [smem:[#allocation18_spill]]  ;;  %s2478_s14 = sld [smem:[#allocation23_spill]] }
 0x5bc   : > { %p18_p10 = scmp.ge.s32.totalorder %s2475_s15, 4  }
 0x5be   :  { %20 = sbr.rel (!%p18_p10) target bundleno = 12 (0xc), region = 86 }
 0x5c5   :  { %1182 = vsyncpa [#allocation5], 1 }
 0x5c6   :  { %1184 = vsyncpa [#allocation5 + $0x1], 1 }
 0x5c7   :  { %1185 = vsyncpa [#allocation9], 1 }
 0x5c8   :  { %1186 = vsyncpa [#allocation6], 1 }
 0x5c9   :  { %1188 = vsyncpa [#allocation6 + $0x1], 1 }
 0x5ca   :  { %1189 = vsyncpa [#allocation7], 1 }
 0x5cb   :  { %1191 = vsyncpa [#allocation7 + $0x1], 1 }

</bundles_post_ra>
